<compile_context>
chip_gen: v7x
topology: tpu7x:2x2x1
jax: 0.10.0
libtpu: 0.0.40
codegen_flags: <defaults>
</compile_context>

<pallas_src>
import functools

import jax
import jax.numpy as jnp
from jax import lax
from jax.experimental import pallas as pl
from jax.experimental.pallas import tpu as pltpu


# ----------------------------------------------------------------------------
# Fused kernel: whole MutualAttn stack for one (batch, query-tile) grid step
# ----------------------------------------------------------------------------

def _mutual_attn_stack_kernel(
    tgt_ref, mem_ref,                           # (1, TQ, E), (1, S, E)
    wq_ref, wkv_ref, wo_ref, w1_ref, w2_ref,    # bf16 weights (wo: (H, D, E))
    bq_ref, bkv_ref, bo_ref, b1_ref, b2_ref,    # f32 biases (1, ...)
    ln1g_ref, ln1b_ref, ln2g_ref, ln2b_ref,     # f32 LN params (1, E)
    out_ref,                                    # (1, TQ, E)
    k_scr, v_scr,                               # VMEM scratch (H, S, D) bf16
    *, num_layers, nhead, eps):
  f32 = jnp.float32
  bf16 = jnp.bfloat16

  E = wq_ref.shape[0]
  H = nhead
  D = E // H
  S = mem_ref.shape[1]
  TQ = tgt_ref.shape[1]

  # Hoisted loop-invariant small params (JAX does not CSE broadcasts/casts).
  bq = bq_ref[...]
  bo = bo_ref[...]
  b1 = b1_ref[...]
  b2 = b2_ref[...]
  ln1g, ln1b = ln1g_ref[...], ln1b_ref[...]
  ln2g, ln2b = ln2g_ref[...], ln2b_ref[...]

  def layer_norm(x, g, b):
    mu = jnp.mean(x, axis=-1, keepdims=True)
    var = jnp.mean((x - mu) ** 2, axis=-1, keepdims=True)
    return (x - mu) * lax.rsqrt(var + eps) * g + b

  def split_heads(y):
    # (N, E) -> (H, N, D): static lane slices stacked along a NEW leading
    # axis (cheap major-axis concat).  All heavy contractions below are then
    # head-batched single dot_generals.
    return jnp.stack([y[:, h * D:(h + 1) * D] for h in range(H)], axis=0)

  # ---- K/V of `mem`: layer- and query-tile-invariant.  Computed once per
  # batch element (query-tile 0) into VMEM scratch; the T-tile grid axis is
  # "arbitrary" so later tiles of the same batch element reuse it. ----
  @pl.when(pl.program_id(1) == 0)
  def _compute_kv():
    mem = mem_ref[0].astype(bf16)                                 # (S, E)
    kv = jnp.dot(mem, wkv_ref[...], preferred_element_type=f32)
    kv = kv + bkv_ref[...]                                        # (S, 2E)
    k_scr[...] = split_heads(kv[:, :E]).astype(bf16)              # (H, S, D)
    v_scr[...] = split_heads(kv[:, E:]).astype(bf16)              # (H, S, D)

  k_hsd = k_scr[...]                                              # (H, S, D)
  v_hsd = v_scr[...]

  def layer(x):
    # ---- multi-head cross attention (1/sqrt(D) pre-folded into wq/bq) ----
    q = jnp.dot(x.astype(bf16), wq_ref[...], preferred_element_type=f32) + bq
    qh = split_heads(q).astype(bf16)                              # (H, TQ, D)
    # scores: ONE head-batched contraction ('htd,hsd->hts')
    s = lax.dot_general(qh, k_hsd,
                        dimension_numbers=(((2,), (2,)), ((0,), (0,))),
                        preferred_element_type=f32)               # (H, TQ, S)
    # TODO(synk): flash-style online softmax over S chunks for long S.
    m = jnp.max(s, axis=-1, keepdims=True)
    p = jnp.exp(s - m)
    denom = jnp.sum(p, axis=-1, keepdims=True)
    p = p * pl.reciprocal(denom, approx=True)
    # P.V: ONE head-batched contraction ('hts,hsd->htd')
    o = lax.dot_general(p.astype(bf16), v_hsd,
                        dimension_numbers=(((2,), (1,)), ((0,), (0,))),
                        preferred_element_type=f32)               # (H, TQ, D)
    # head merge folded into the output projection ('htd,hde->hte', sum over h)
    ao = lax.dot_general(o.astype(bf16), wo_ref[...],
                         dimension_numbers=(((2,), (1,)), ((0,), (0,))),
                         preferred_element_type=f32)              # (H, TQ, E)
    attn_out = jnp.sum(ao, axis=0) + bo                           # (TQ, E)

    # ---- residual + post-LN 1 (dropout identity in eval mode) ----
    x1 = layer_norm(x + attn_out, ln1g, ln1b)

    # ---- FFN (Linear -> ReLU -> Linear) + residual + post-LN 2 ----
    hmid = jnp.maximum(
        jnp.dot(x1.astype(bf16), w1_ref[...], preferred_element_type=f32) + b1,
        0.0)
    hout = jnp.dot(hmid.astype(bf16), w2_ref[...],
                   preferred_element_type=f32) + b2
    return layer_norm(x1 + hout, ln2g, ln2b)

  # deepcopy clones share identical params -> no per-layer weight indexing;
  # fori_loop bounds live ranges vs. a statically unrolled Python loop.
  x = lax.fori_loop(0, num_layers, lambda _, xc: layer(xc),
                    tgt_ref[0].astype(f32))
  out_ref[0] = x.astype(out_ref.dtype)


# ----------------------------------------------------------------------------
# Parameters + forward wrapper
# ----------------------------------------------------------------------------

def init_layer_params(key, embed_dim, ffn_dim, dtype=jnp.float32):
  ks = jax.random.split(key, 12)
  s = 0.02
  return {
      # attention projections stored as (in, out) so y = x @ w + b
      "wq": s * jax.random.normal(ks[0], (embed_dim, embed_dim), dtype),
      "bq": s * jax.random.normal(ks[1], (embed_dim,), dtype),
      "wk": s * jax.random.normal(ks[2], (embed_dim, embed_dim), dtype),
      "bk": s * jax.random.normal(ks[3], (embed_dim,), dtype),
      "wv": s * jax.random.normal(ks[4], (embed_dim, embed_dim), dtype),
      "bv": s * jax.random.normal(ks[5], (embed_dim,), dtype),
      "wo": s * jax.random.normal(ks[6], (embed_dim, embed_dim), dtype),
      "bo": s * jax.random.normal(ks[7], (embed_dim,), dtype),
      # feed-forward
      "w1": s * jax.random.normal(ks[8], (embed_dim, ffn_dim), dtype),
      "b1": s * jax.random.normal(ks[9], (ffn_dim,), dtype),
      "w2": s * jax.random.normal(ks[10], (ffn_dim, embed_dim), dtype),
      "b2": s * jax.random.normal(ks[11], (embed_dim,), dtype),
      # layer norms
      "ln1_g": jnp.ones((embed_dim,), dtype),
      "ln1_b": jnp.zeros((embed_dim,), dtype),
      "ln2_g": jnp.ones((embed_dim,), dtype),
      "ln2_b": jnp.zeros((embed_dim,), dtype),
  }


def mutual_attn_forward(tgt, mem, params, *, num_layers, nhead,
                        mem_mask=None, mem_key_padding_mask=None,
                        tile_q=128):
  """MutualAttn.forward.  tgt: (T, B, E), mem: (S, B, E) -> (T, B, E)."""
  if mem_mask is not None or mem_key_padding_mask is not None:
    raise NotImplementedError(
        "TODO(synk): mem_mask / mem_key_padding_mask are not supported")

  T, B, E = tgt.shape
  S = mem.shape[0]
  H = nhead
  D = E // H
  FFN = params["w1"].shape[1]
  bf16, f32 = jnp.bfloat16, jnp.float32
  scale = 1.0 / float(D) ** 0.5

  # Query-tile size (multiple of 8 sublanes, or the full T).
  TQ = T if T <= tile_q else tile_q
  nT = pl.cdiv(T, TQ)

  # One-time seq-first -> batch-first transpose for the whole stack.
  tgt_b = jnp.transpose(tgt, (1, 0, 2))                 # (B, T, E)
  mem_b = jnp.transpose(mem, (1, 0, 2))                 # (B, S, E)

  # bf16 MXU weights (f32 accumulation in-kernel):
  #  - softmax 1/sqrt(D) folded into the Q projection (no per-layer mul)
  #  - K/V projections fused into one (E, 2E) matmul
  #  - output projection reshaped to (H, D, E) so the head merge happens
  #    inside a batched matmul instead of a lane-axis concat.
  wq = (params["wq"] * scale).astype(bf16)
  bq = (params["bq"] * scale).astype(f32).reshape(1, E)
  wkv = jnp.concatenate([params["wk"], params["wv"]], axis=1).astype(bf16)
  bkv = jnp.concatenate([params["bk"], params["bv"]]).astype(f32).reshape(1, 2 * E)
  wo = params["wo"].reshape(H, D, E).astype(bf16)
  bo = params["bo"].astype(f32).reshape(1, E)
  w1 = params["w1"].astype(bf16)
  b1 = params["b1"].astype(f32).reshape(1, FFN)
  w2 = params["w2"].astype(bf16)
  b2 = params["b2"].astype(f32).reshape(1, E)
  ln1g = params["ln1_g"].astype(f32).reshape(1, E)
  ln1b = params["ln1_b"].astype(f32).reshape(1, E)
  ln2g = params["ln2_g"].astype(f32).reshape(1, E)
  ln2b = params["ln2_b"].astype(f32).reshape(1, E)

  weights = (wq, wkv, wo, w1, w2, bq, bkv, bo, b1, b2, ln1g, ln1b, ln2g, ln2b)

  # Explicit VMEM budget (v7x has only 64 MiB physical VMEM).
  # TODO(synk): single-buffer the constant-index weight blocks
  # (pipeline_mode=pl.Buffered(1)) once validated on-device.
  weight_bytes = sum(int(a.size) * a.dtype.itemsize for a in weights)
  io_bytes = (2 * TQ * E + S * E) * tgt_b.dtype.itemsize
  scr_bytes = 2 * H * S * D * 2
  need = 2 * (weight_bytes + io_bytes) + scr_bytes + (16 << 20)
  vmem_limit = int(min(max(need, 32 << 20), 64 << 20))

  def full(shape):
    return pl.BlockSpec(shape, lambda b, t: (0,) * len(shape))

  kern = functools.partial(_mutual_attn_stack_kernel,
                           num_layers=num_layers, nhead=nhead, eps=1e-5)

  out_b = pl.pallas_call(
      kern,
      out_shape=jax.ShapeDtypeStruct((B, T, E), tgt.dtype),
      grid=(B, nT),
      in_specs=[
          pl.BlockSpec((1, TQ, E), lambda b, t: (b, t, 0)),
          pl.BlockSpec((1, S, E), lambda b, t: (b, 0, 0)),
          full((E, E)), full((E, 2 * E)), full((H, D, E)),
          full((E, FFN)), full((FFN, E)),
          full((1, E)), full((1, 2 * E)), full((1, E)),
          full((1, FFN)), full((1, E)),
          full((1, E)), full((1, E)), full((1, E)), full((1, E)),
      ],
      out_specs=pl.BlockSpec((1, TQ, E), lambda b, t: (b, t, 0)),
      scratch_shapes=[pltpu.VMEM((H, S, D), bf16),
                      pltpu.VMEM((H, S, D), bf16)],
      compiler_params=pltpu.CompilerParams(
          dimension_semantics=("parallel", "arbitrary"),
          vmem_limit_bytes=vmem_limit),
  )(tgt_b, mem_b, *weights)

  # batch-first -> seq-first at the boundary.
  return jnp.transpose(out_b, (1, 0, 2))


# ----------------------------------------------------------------------------
# Demo
# ----------------------------------------------------------------------------

if __name__ == "__main__":
  # Small but lane-dense shapes: E and FFN are multiples of 128, T is split
  # into two query tiles to exercise the (B, T-tile) grid + K/V scratch reuse.
  T, S, B, E, H, FFN, N_LAYERS = 32, 16, 2, 128, 4, 256, 2

  key = jax.random.PRNGKey(0)
  k_tgt, k_mem, k_par = jax.random.split(key, 3)
  tgt = jax.random.normal(k_tgt, (T, B, E), jnp.float32)
  mem = jax.random.normal(k_mem, (S, B, E), jnp.float32)
  params = init_layer_params(k_par, E, FFN)

  fwd = jax.jit(mutual_attn_forward,
                static_argnames=("num_layers", "nhead", "tile_q"))
  out = fwd(tgt, mem, params, num_layers=N_LAYERS, nhead=H, tile_q=16)
  jax.block_until_ready(out)

  assert out.shape == (T, B, E) and out.dtype == jnp.float32
  print("KERNEL_OK")
</pallas_src>

<mosaic_0001>
module attributes {stable_mosaic.version = 11 : i64} {
  func.func @_mutual_attn_stack_kernel(%arg0: i32, %arg1: i32, %arg2: memref<1x16x128xf32, #tpu.memory_space<vmem>>, %arg3: memref<1x16x128xf32, #tpu.memory_space<vmem>>, %arg4: memref<128x128xbf16, #tpu.memory_space<vmem>>, %arg5: memref<128x256xbf16, #tpu.memory_space<vmem>>, %arg6: memref<4x32x128xbf16, #tpu.memory_space<vmem>>, %arg7: memref<128x256xbf16, #tpu.memory_space<vmem>>, %arg8: memref<256x128xbf16, #tpu.memory_space<vmem>>, %arg9: memref<1x128xf32, #tpu.memory_space<vmem>>, %arg10: memref<1x256xf32, #tpu.memory_space<vmem>>, %arg11: memref<1x128xf32, #tpu.memory_space<vmem>>, %arg12: memref<1x256xf32, #tpu.memory_space<vmem>>, %arg13: memref<1x128xf32, #tpu.memory_space<vmem>>, %arg14: memref<1x128xf32, #tpu.memory_space<vmem>>, %arg15: memref<1x128xf32, #tpu.memory_space<vmem>>, %arg16: memref<1x128xf32, #tpu.memory_space<vmem>>, %arg17: memref<1x128xf32, #tpu.memory_space<vmem>>, %arg18: memref<1x16x128xf32, #tpu.memory_space<vmem>>, %arg19: memref<4x16x32xbf16, #tpu.memory_space<vmem>>, %arg20: memref<4x16x32xbf16, #tpu.memory_space<vmem>>) attributes {dimension_semantics = [#tpu.dimension_semantics<parallel>, #tpu.dimension_semantics<arbitrary>], iteration_bounds = array<i64: 2, 2>, scalar_prefetch = 0 : i64, scratch_operands = 2 : i64, tpu.core_type = #tpu.core_type<tc>, window_params = [{transform_indices = @transform_0, window_bounds = array<i64: 1, 16, 128>}, {transform_indices = @transform_1, window_bounds = array<i64: 1, 16, 128>}, {pipeline_mode = #tpu.pipeline_mode<synchronous>, transform_indices = @transform_2, window_bounds = array<i64: 128, 128>}, {pipeline_mode = #tpu.pipeline_mode<synchronous>, transform_indices = @transform_3, window_bounds = array<i64: 128, 256>}, {pipeline_mode = #tpu.pipeline_mode<synchronous>, transform_indices = @transform_4, window_bounds = array<i64: 4, 32, 128>}, {pipeline_mode = #tpu.pipeline_mode<synchronous>, transform_indices = @transform_5, window_bounds = array<i64: 128, 256>}, {pipeline_mode = #tpu.pipeline_mode<synchronous>, transform_indices = @transform_6, window_bounds = array<i64: 256, 128>}, {pipeline_mode = #tpu.pipeline_mode<synchronous>, transform_indices = @transform_7, window_bounds = array<i64: 1, 128>}, {pipeline_mode = #tpu.pipeline_mode<synchronous>, transform_indices = @transform_8, window_bounds = array<i64: 1, 256>}, {pipeline_mode = #tpu.pipeline_mode<synchronous>, transform_indices = @transform_9, window_bounds = array<i64: 1, 128>}, {pipeline_mode = #tpu.pipeline_mode<synchronous>, transform_indices = @transform_10, window_bounds = array<i64: 1, 256>}, {pipeline_mode = #tpu.pipeline_mode<synchronous>, transform_indices = @transform_11, window_bounds = array<i64: 1, 128>}, {pipeline_mode = #tpu.pipeline_mode<synchronous>, transform_indices = @transform_12, window_bounds = array<i64: 1, 128>}, {pipeline_mode = #tpu.pipeline_mode<synchronous>, transform_indices = @transform_13, window_bounds = array<i64: 1, 128>}, {pipeline_mode = #tpu.pipeline_mode<synchronous>, transform_indices = @transform_14, window_bounds = array<i64: 1, 128>}, {pipeline_mode = #tpu.pipeline_mode<synchronous>, transform_indices = @transform_15, window_bounds = array<i64: 1, 128>}, {transform_indices = @transform_16, window_bounds = array<i64: 1, 16, 128>}]} {
    %c0 = arith.constant 0 : index
    %c0_0 = arith.constant 0 : index
    %0 = vector.load %arg9[%c0, %c0_0] : memref<1x128xf32, #tpu.memory_space<vmem>>, vector<1x128xf32>
    %c0_1 = arith.constant 0 : index
    %c0_2 = arith.constant 0 : index
    %1 = vector.load %arg11[%c0_1, %c0_2] : memref<1x128xf32, #tpu.memory_space<vmem>>, vector<1x128xf32>
    %c0_3 = arith.constant 0 : index
    %c0_4 = arith.constant 0 : index
    %2 = vector.load %arg12[%c0_3, %c0_4] : memref<1x256xf32, #tpu.memory_space<vmem>>, vector<1x256xf32>
    %c0_5 = arith.constant 0 : index
    %c0_6 = arith.constant 0 : index
    %3 = vector.load %arg13[%c0_5, %c0_6] : memref<1x128xf32, #tpu.memory_space<vmem>>, vector<1x128xf32>
    %c0_7 = arith.constant 0 : index
    %c0_8 = arith.constant 0 : index
    %4 = vector.load %arg14[%c0_7, %c0_8] : memref<1x128xf32, #tpu.memory_space<vmem>>, vector<1x128xf32>
    %c0_9 = arith.constant 0 : index
    %c0_10 = arith.constant 0 : index
    %5 = vector.load %arg15[%c0_9, %c0_10] : memref<1x128xf32, #tpu.memory_space<vmem>>, vector<1x128xf32>
    %c0_11 = arith.constant 0 : index
    %c0_12 = arith.constant 0 : index
    %6 = vector.load %arg16[%c0_11, %c0_12] : memref<1x128xf32, #tpu.memory_space<vmem>>, vector<1x128xf32>
    %c0_13 = arith.constant 0 : index
    %c0_14 = arith.constant 0 : index
    %7 = vector.load %arg17[%c0_13, %c0_14] : memref<1x128xf32, #tpu.memory_space<vmem>>, vector<1x128xf32>
    %c0_i32 = arith.constant 0 : i32
    %8 = arith.cmpi eq, %arg1, %c0_i32 : i32
    %9 = arith.extui %8 : i1 to i32
    %c0_i32_15 = arith.constant 0 : i32
    %10 = arith.cmpi ne, %9, %c0_i32_15 : i32
    scf.if %10 {
      %c0_29 = arith.constant 0 : index
      %c0_30 = arith.constant 0 : index
      %c0_31 = arith.constant 0 : index
      %20 = vector.load %arg3[%c0_29, %c0_30, %c0_31] : memref<1x16x128xf32, #tpu.memory_space<vmem>>, vector<1x16x128xf32>
      %21 = vector.shape_cast %20 : vector<1x16x128xf32> to vector<16x128xf32>
      %22 = arith.truncf %21 : vector<16x128xf32> to vector<16x128xbf16>
      %c0_32 = arith.constant 0 : index
      %c0_33 = arith.constant 0 : index
      %23 = vector.load %arg5[%c0_32, %c0_33] : memref<128x256xbf16, #tpu.memory_space<vmem>>, vector<128x256xbf16>
      %cst = arith.constant dense<0.000000e+00> : vector<16x256xf32>
      %24 = tpu.matmul %22, %23, %cst {dimension_numbers = #tpu.dot_dimension_numbers<[1], [0], [0], [1], [0, 0, 1, 1], [], []>} : vector<16x128xbf16>, vector<128x256xbf16>, vector<16x256xf32> -> vector<16x256xf32>
      %c0_34 = arith.constant 0 : index
      %c0_35 = arith.constant 0 : index
      %25 = vector.load %arg10[%c0_34, %c0_35] : memref<1x256xf32, #tpu.memory_space<vmem>>, vector<1x256xf32>
      %26 = vector.broadcast %25 : vector<1x256xf32> to vector<16x256xf32>
      %27 = arith.addf %24, %26 : vector<16x256xf32>
      %28 = vector.extract_strided_slice %27 {offsets = [0, 0], sizes = [16, 128], strides = [1, 1]} : vector<16x256xf32> to vector<16x128xf32>
      %29 = vector.extract_strided_slice %28 {offsets = [0, 0], sizes = [16, 32], strides = [1, 1]} : vector<16x128xf32> to vector<16x32xf32>
      %30 = vector.extract_strided_slice %28 {offsets = [0, 32], sizes = [16, 32], strides = [1, 1]} : vector<16x128xf32> to vector<16x32xf32>
      %31 = vector.extract_strided_slice %28 {offsets = [0, 64], sizes = [16, 32], strides = [1, 1]} : vector<16x128xf32> to vector<16x32xf32>
      %32 = vector.extract_strided_slice %28 {offsets = [0, 96], sizes = [16, 32], strides = [1, 1]} : vector<16x128xf32> to vector<16x32xf32>
      %33 = vector.shape_cast %29 : vector<16x32xf32> to vector<1x16x32xf32>
      %34 = vector.shape_cast %30 : vector<16x32xf32> to vector<1x16x32xf32>
      %35 = vector.shape_cast %31 : vector<16x32xf32> to vector<1x16x32xf32>
      %36 = vector.shape_cast %32 : vector<16x32xf32> to vector<1x16x32xf32>
      %37 = tpu.concatenate %33, %34, %35, %36 in 0 : vector<1x16x32xf32>, vector<1x16x32xf32>, vector<1x16x32xf32>, vector<1x16x32xf32> -> vector<4x16x32xf32>
      %38 = arith.truncf %37 : vector<4x16x32xf32> to vector<4x16x32xbf16>
      %c0_36 = arith.constant 0 : index
      %c0_37 = arith.constant 0 : index
      %c0_38 = arith.constant 0 : index
      %39 = vector.load %arg19[%c0_36, %c0_37, %c0_38] : memref<4x16x32xbf16, #tpu.memory_space<vmem>>, vector<4x16x32xbf16>
      tpu.vector_store %arg19[%c0_36, %c0_37, %c0_38], %38 {strides = array<i32>} : memref<4x16x32xbf16, #tpu.memory_space<vmem>>, vector<4x16x32xbf16>,
      %40 = vector.extract_strided_slice %27 {offsets = [0, 128], sizes = [16, 128], strides = [1, 1]} : vector<16x256xf32> to vector<16x128xf32>
      %41 = vector.extract_strided_slice %40 {offsets = [0, 0], sizes = [16, 32], strides = [1, 1]} : vector<16x128xf32> to vector<16x32xf32>
      %42 = vector.extract_strided_slice %40 {offsets = [0, 32], sizes = [16, 32], strides = [1, 1]} : vector<16x128xf32> to vector<16x32xf32>
      %43 = vector.extract_strided_slice %40 {offsets = [0, 64], sizes = [16, 32], strides = [1, 1]} : vector<16x128xf32> to vector<16x32xf32>
      %44 = vector.extract_strided_slice %40 {offsets = [0, 96], sizes = [16, 32], strides = [1, 1]} : vector<16x128xf32> to vector<16x32xf32>
      %45 = vector.shape_cast %41 : vector<16x32xf32> to vector<1x16x32xf32>
      %46 = vector.shape_cast %42 : vector<16x32xf32> to vector<1x16x32xf32>
      %47 = vector.shape_cast %43 : vector<16x32xf32> to vector<1x16x32xf32>
      %48 = vector.shape_cast %44 : vector<16x32xf32> to vector<1x16x32xf32>
      %49 = tpu.concatenate %45, %46, %47, %48 in 0 : vector<1x16x32xf32>, vector<1x16x32xf32>, vector<1x16x32xf32>, vector<1x16x32xf32> -> vector<4x16x32xf32>
      %50 = arith.truncf %49 : vector<4x16x32xf32> to vector<4x16x32xbf16>
      %c0_39 = arith.constant 0 : index
      %c0_40 = arith.constant 0 : index
      %c0_41 = arith.constant 0 : index
      %51 = vector.load %arg20[%c0_39, %c0_40, %c0_41] : memref<4x16x32xbf16, #tpu.memory_space<vmem>>, vector<4x16x32xbf16>
      tpu.vector_store %arg20[%c0_39, %c0_40, %c0_41], %50 {strides = array<i32>} : memref<4x16x32xbf16, #tpu.memory_space<vmem>>, vector<4x16x32xbf16>,
    } else {
    }
    %c0_16 = arith.constant 0 : index
    %c0_17 = arith.constant 0 : index
    %c0_18 = arith.constant 0 : index
    %11 = vector.load %arg19[%c0_16, %c0_17, %c0_18] : memref<4x16x32xbf16, #tpu.memory_space<vmem>>, vector<4x16x32xbf16>
    %c0_19 = arith.constant 0 : index
    %c0_20 = arith.constant 0 : index
    %c0_21 = arith.constant 0 : index
    %12 = vector.load %arg20[%c0_19, %c0_20, %c0_21] : memref<4x16x32xbf16, #tpu.memory_space<vmem>>, vector<4x16x32xbf16>
    %c0_22 = arith.constant 0 : index
    %c0_23 = arith.constant 0 : index
    %c0_24 = arith.constant 0 : index
    %13 = vector.load %arg2[%c0_22, %c0_23, %c0_24] : memref<1x16x128xf32, #tpu.memory_space<vmem>>, vector<1x16x128xf32>
    %14 = vector.shape_cast %13 : vector<1x16x128xf32> to vector<16x128xf32>
    %c0_i32_25 = arith.constant 0 : i32
    %c2_i32 = arith.constant 2 : i32
    %15 = arith.addi %c0_i32_25, %c2_i32 : i32
    %c1_i32 = arith.constant 1 : i32
    %16 = scf.for %arg21 = %c0_i32_25 to %15 step %c1_i32 iter_args(%arg22 = %14) -> (vector<16x128xf32>)  : i32 {
      %20 = arith.truncf %arg22 : vector<16x128xf32> to vector<16x128xbf16>
      %c0_29 = arith.constant 0 : index
      %c0_30 = arith.constant 0 : index
      %21 = vector.load %arg4[%c0_29, %c0_30] : memref<128x128xbf16, #tpu.memory_space<vmem>>, vector<128x128xbf16>
      %cst = arith.constant dense<0.000000e+00> : vector<16x128xf32>
      %22 = tpu.matmul %20, %21, %cst {dimension_numbers = #tpu.dot_dimension_numbers<[1], [0], [0], [1], [0, 0, 1, 1], [], []>} : vector<16x128xbf16>, vector<128x128xbf16>, vector<16x128xf32> -> vector<16x128xf32>
      %23 = vector.broadcast %0 : vector<1x128xf32> to vector<16x128xf32>
      %24 = arith.addf %22, %23 : vector<16x128xf32>
      %25 = vector.extract_strided_slice %24 {offsets = [0, 0], sizes = [16, 32], strides = [1, 1]} : vector<16x128xf32> to vector<16x32xf32>
      %26 = vector.extract_strided_slice %24 {offsets = [0, 32], sizes = [16, 32], strides = [1, 1]} : vector<16x128xf32> to vector<16x32xf32>
      %27 = vector.extract_strided_slice %24 {offsets = [0, 64], sizes = [16, 32], strides = [1, 1]} : vector<16x128xf32> to vector<16x32xf32>
      %28 = vector.extract_strided_slice %24 {offsets = [0, 96], sizes = [16, 32], strides = [1, 1]} : vector<16x128xf32> to vector<16x32xf32>
      %29 = vector.shape_cast %25 : vector<16x32xf32> to vector<1x16x32xf32>
      %30 = vector.shape_cast %26 : vector<16x32xf32> to vector<1x16x32xf32>
      %31 = vector.shape_cast %27 : vector<16x32xf32> to vector<1x16x32xf32>
      %32 = vector.shape_cast %28 : vector<16x32xf32> to vector<1x16x32xf32>
      %33 = tpu.concatenate %29, %30, %31, %32 in 0 : vector<1x16x32xf32>, vector<1x16x32xf32>, vector<1x16x32xf32>, vector<1x16x32xf32> -> vector<4x16x32xf32>
      %34 = arith.truncf %33 : vector<4x16x32xf32> to vector<4x16x32xbf16>
      %cst_31 = arith.constant dense<0.000000e+00> : vector<4x16x16xf32>
      %35 = tpu.matmul %34, %11, %cst_31 {dimension_numbers = #tpu.dot_dimension_numbers<[2], [2], [1], [1], [0, 0, 0, 1, 1, 1], [0], [0]>} : vector<4x16x32xbf16>, vector<4x16x32xbf16>, vector<4x16x16xf32> -> vector<4x16x16xf32>
      %cst_32 = arith.constant dense<0xFF800000> : vector<4x16xf32>
      %36 = vector.multi_reduction <maximumf>, %35, %cst_32 [2] : vector<4x16x16xf32> to vector<4x16xf32>
      %37 = vector.shape_cast %36 : vector<4x16xf32> to vector<4x16x1xf32>
      %38 = vector.broadcast %37 : vector<4x16x1xf32> to vector<4x16x16xf32>
      %39 = arith.subf %35, %38 : vector<4x16x16xf32>
      %40 = math.exp %39 : vector<4x16x16xf32>
      %cst_33 = arith.constant dense<0.000000e+00> : vector<4x16xf32>
      %41 = vector.multi_reduction <add>, %40, %cst_33 [2] : vector<4x16x16xf32> to vector<4x16xf32>
      %42 = vector.shape_cast %41 : vector<4x16xf32> to vector<4x16x1xf32>
      %43 = tpu.reciprocal %42 {approx = true} : vector<4x16x1xf32> -> vector<4x16x1xf32>
      %44 = vector.broadcast %43 : vector<4x16x1xf32> to vector<4x16x16xf32>
      %45 = arith.mulf %40, %44 : vector<4x16x16xf32>
      %46 = arith.truncf %45 : vector<4x16x16xf32> to vector<4x16x16xbf16>
      %cst_34 = arith.constant dense<0.000000e+00> : vector<4x16x32xf32>
      %47 = tpu.matmul %46, %12, %cst_34 {dimension_numbers = #tpu.dot_dimension_numbers<[2], [1], [1], [2], [0, 0, 0, 1, 1, 2], [0], [0]>} : vector<4x16x16xbf16>, vector<4x16x32xbf16>, vector<4x16x32xf32> -> vector<4x16x32xf32>
      %48 = arith.truncf %47 : vector<4x16x32xf32> to vector<4x16x32xbf16>
      %c0_35 = arith.constant 0 : index
      %c0_36 = arith.constant 0 : index
      %c0_37 = arith.constant 0 : index
      %49 = vector.load %arg6[%c0_35, %c0_36, %c0_37] : memref<4x32x128xbf16, #tpu.memory_space<vmem>>, vector<4x32x128xbf16>
      %cst_38 = arith.constant dense<0.000000e+00> : vector<4x16x128xf32>
      %50 = tpu.matmul %48, %49, %cst_38 {dimension_numbers = #tpu.dot_dimension_numbers<[2], [1], [1], [2], [0, 0, 0, 1, 1, 2], [0], [0]>} : vector<4x16x32xbf16>, vector<4x32x128xbf16>, vector<4x16x128xf32> -> vector<4x16x128xf32>
      %cst_39 = arith.constant dense<0.000000e+00> : vector<16x128xf32>
      %51 = vector.multi_reduction <add>, %50, %cst_39 [0] : vector<4x16x128xf32> to vector<16x128xf32>
      %52 = vector.broadcast %1 : vector<1x128xf32> to vector<16x128xf32>
      %53 = arith.addf %51, %52 : vector<16x128xf32>
      %54 = arith.addf %arg22, %53 : vector<16x128xf32>
      %cst_40 = arith.constant dense<0.000000e+00> : vector<16xf32>
      %55 = vector.multi_reduction <add>, %54, %cst_40 [1] : vector<16x128xf32> to vector<16xf32>
      %56 = vector.shape_cast %55 : vector<16xf32> to vector<16x1xf32>
      %cst_41 = arith.constant 1.280000e+02 : f32
      %57 = vector.broadcast %cst_41 : f32 to vector<16x1xf32>
      %58 = arith.divf %56, %57 : vector<16x1xf32>
      %59 = vector.broadcast %58 : vector<16x1xf32> to vector<16x128xf32>
      %60 = arith.subf %54, %59 : vector<16x128xf32>
      %61 = arith.mulf %60, %60 : vector<16x128xf32>
      %cst_42 = arith.constant dense<0.000000e+00> : vector<16xf32>
      %62 = vector.multi_reduction <add>, %61, %cst_42 [1] : vector<16x128xf32> to vector<16xf32>
      %63 = vector.shape_cast %62 : vector<16xf32> to vector<16x1xf32>
      %cst_43 = arith.constant 1.280000e+02 : f32
      %64 = vector.broadcast %cst_43 : f32 to vector<16x1xf32>
      %65 = arith.divf %63, %64 : vector<16x1xf32>
      %66 = vector.broadcast %58 : vector<16x1xf32> to vector<16x128xf32>
      %67 = arith.subf %54, %66 : vector<16x128xf32>
      %cst_44 = arith.constant 9.99999974E-6 : f32
      %68 = vector.broadcast %cst_44 : f32 to vector<16x1xf32>
      %69 = arith.addf %65, %68 : vector<16x1xf32>
      %70 = math.rsqrt %69 : vector<16x1xf32>
      %71 = vector.broadcast %70 : vector<16x1xf32> to vector<16x128xf32>
      %72 = arith.mulf %67, %71 : vector<16x128xf32>
      %73 = vector.broadcast %4 : vector<1x128xf32> to vector<16x128xf32>
      %74 = arith.mulf %72, %73 : vector<16x128xf32>
      %75 = vector.broadcast %5 : vector<1x128xf32> to vector<16x128xf32>
      %76 = arith.addf %74, %75 : vector<16x128xf32>
      %77 = arith.truncf %76 : vector<16x128xf32> to vector<16x128xbf16>
      %c0_45 = arith.constant 0 : index
      %c0_46 = arith.constant 0 : index
      %78 = vector.load %arg7[%c0_45, %c0_46] : memref<128x256xbf16, #tpu.memory_space<vmem>>, vector<128x256xbf16>
      %cst_47 = arith.constant dense<0.000000e+00> : vector<16x256xf32>
      %79 = tpu.matmul %77, %78, %cst_47 {dimension_numbers = #tpu.dot_dimension_numbers<[1], [0], [0], [1], [0, 0, 1, 1], [], []>} : vector<16x128xbf16>, vector<128x256xbf16>, vector<16x256xf32> -> vector<16x256xf32>
      %80 = vector.broadcast %2 : vector<1x256xf32> to vector<16x256xf32>
      %81 = arith.addf %79, %80 : vector<16x256xf32>
      %cst_48 = arith.constant 0.000000e+00 : f32
      %82 = vector.broadcast %cst_48 : f32 to vector<16x256xf32>
      %83 = arith.maximumf %81, %82 : vector<16x256xf32>
      %84 = arith.truncf %83 : vector<16x256xf32> to vector<16x256xbf16>
      %c0_49 = arith.constant 0 : index
      %c0_50 = arith.constant 0 : index
      %85 = vector.load %arg8[%c0_49, %c0_50] : memref<256x128xbf16, #tpu.memory_space<vmem>>, vector<256x128xbf16>
      %cst_51 = arith.constant dense<0.000000e+00> : vector<16x128xf32>
      %86 = tpu.matmul %84, %85, %cst_51 {dimension_numbers = #tpu.dot_dimension_numbers<[1], [0], [0], [1], [0, 0, 1, 1], [], []>} : vector<16x256xbf16>, vector<256x128xbf16>, vector<16x128xf32> -> vector<16x128xf32>
      %87 = vector.broadcast %3 : vector<1x128xf32> to vector<16x128xf32>
      %88 = arith.addf %86, %87 : vector<16x128xf32>
      %89 = arith.addf %76, %88 : vector<16x128xf32>
      %cst_52 = arith.constant dense<0.000000e+00> : vector<16xf32>
      %90 = vector.multi_reduction <add>, %89, %cst_52 [1] : vector<16x128xf32> to vector<16xf32>
      %91 = vector.shape_cast %90 : vector<16xf32> to vector<16x1xf32>
      %cst_53 = arith.constant 1.280000e+02 : f32
      %92 = vector.broadcast %cst_53 : f32 to vector<16x1xf32>
      %93 = arith.divf %91, %92 : vector<16x1xf32>
      %94 = vector.broadcast %93 : vector<16x1xf32> to vector<16x128xf32>
      %95 = arith.subf %89, %94 : vector<16x128xf32>
      %96 = arith.mulf %95, %95 : vector<16x128xf32>
      %cst_54 = arith.constant dense<0.000000e+00> : vector<16xf32>
      %97 = vector.multi_reduction <add>, %96, %cst_54 [1] : vector<16x128xf32> to vector<16xf32>
      %98 = vector.shape_cast %97 : vector<16xf32> to vector<16x1xf32>
      %cst_55 = arith.constant 1.280000e+02 : f32
      %99 = vector.broadcast %cst_55 : f32 to vector<16x1xf32>
      %100 = arith.divf %98, %99 : vector<16x1xf32>
      %101 = vector.broadcast %93 : vector<16x1xf32> to vector<16x128xf32>
      %102 = arith.subf %89, %101 : vector<16x128xf32>
      %cst_56 = arith.constant 9.99999974E-6 : f32
      %103 = vector.broadcast %cst_56 : f32 to vector<16x1xf32>
      %104 = arith.addf %100, %103 : vector<16x1xf32>
      %105 = math.rsqrt %104 : vector<16x1xf32>
      %106 = vector.broadcast %105 : vector<16x1xf32> to vector<16x128xf32>
      %107 = arith.mulf %102, %106 : vector<16x128xf32>
      %108 = vector.broadcast %6 : vector<1x128xf32> to vector<16x128xf32>
      %109 = arith.mulf %107, %108 : vector<16x128xf32>
      %110 = vector.broadcast %7 : vector<1x128xf32> to vector<16x128xf32>
      %111 = arith.addf %109, %110 : vector<16x128xf32>
      scf.yield %111 : vector<16x128xf32>
    }
    %c0_26 = arith.constant 0 : index
    %c0_27 = arith.constant 0 : index
    %c0_28 = arith.constant 0 : index
    %17 = vector.load %arg18[%c0_26, %c0_27, %c0_28] : memref<1x16x128xf32, #tpu.memory_space<vmem>>, vector<1x16x128xf32>
    %18 = vector.shape_cast %17 : vector<1x16x128xf32> to vector<16x128xf32>
    %19 = vector.shape_cast %16 : vector<16x128xf32> to vector<1x16x128xf32>
    tpu.vector_store %arg18[%c0_26, %c0_27, %c0_28], %19 {strides = array<i32>} : memref<1x16x128xf32, #tpu.memory_space<vmem>>, vector<1x16x128xf32>,
    return
  }
  func.func @transform_0(%arg0: i32, %arg1: i32) -> (i32, i32, i32) {
    %c0_i32 = arith.constant 0 : i32
    %c0_i32_0 = arith.constant 0 : i32
    return %arg0, %arg1, %c0_i32 : i32, i32, i32
  }
  func.func @transform_1(%arg0: i32, %arg1: i32) -> (i32, i32, i32) {
    %c0_i32 = arith.constant 0 : i32
    %c0_i32_0 = arith.constant 0 : i32
    %c0_i32_1 = arith.constant 0 : i32
    return %arg0, %c0_i32, %c0_i32_0 : i32, i32, i32
  }
  func.func @transform_2(%arg0: i32, %arg1: i32) -> (i32, i32) {
    %c0_i32 = arith.constant 0 : i32
    %c0_i32_0 = arith.constant 0 : i32
    %c0_i32_1 = arith.constant 0 : i32
    return %c0_i32, %c0_i32_0 : i32, i32
  }
  func.func @transform_3(%arg0: i32, %arg1: i32) -> (i32, i32) {
    %c0_i32 = arith.constant 0 : i32
    %c0_i32_0 = arith.constant 0 : i32
    %c0_i32_1 = arith.constant 0 : i32
    return %c0_i32, %c0_i32_0 : i32, i32
  }
  func.func @transform_4(%arg0: i32, %arg1: i32) -> (i32, i32, i32) {
    %c0_i32 = arith.constant 0 : i32
    %c0_i32_0 = arith.constant 0 : i32
    %c0_i32_1 = arith.constant 0 : i32
    %c0_i32_2 = arith.constant 0 : i32
    return %c0_i32, %c0_i32_0, %c0_i32_1 : i32, i32, i32
  }
  func.func @transform_5(%arg0: i32, %arg1: i32) -> (i32, i32) {
    %c0_i32 = arith.constant 0 : i32
    %c0_i32_0 = arith.constant 0 : i32
    %c0_i32_1 = arith.constant 0 : i32
    return %c0_i32, %c0_i32_0 : i32, i32
  }
  func.func @transform_6(%arg0: i32, %arg1: i32) -> (i32, i32) {
    %c0_i32 = arith.constant 0 : i32
    %c0_i32_0 = arith.constant 0 : i32
    %c0_i32_1 = arith.constant 0 : i32
    return %c0_i32, %c0_i32_0 : i32, i32
  }
  func.func @transform_7(%arg0: i32, %arg1: i32) -> (i32, i32) {
    %c0_i32 = arith.constant 0 : i32
    %c0_i32_0 = arith.constant 0 : i32
    %c0_i32_1 = arith.constant 0 : i32
    return %c0_i32, %c0_i32_0 : i32, i32
  }
  func.func @transform_8(%arg0: i32, %arg1: i32) -> (i32, i32) {
    %c0_i32 = arith.constant 0 : i32
    %c0_i32_0 = arith.constant 0 : i32
    %c0_i32_1 = arith.constant 0 : i32
    return %c0_i32, %c0_i32_0 : i32, i32
  }
  func.func @transform_9(%arg0: i32, %arg1: i32) -> (i32, i32) {
    %c0_i32 = arith.constant 0 : i32
    %c0_i32_0 = arith.constant 0 : i32
    %c0_i32_1 = arith.constant 0 : i32
    return %c0_i32, %c0_i32_0 : i32, i32
  }
  func.func @transform_10(%arg0: i32, %arg1: i32) -> (i32, i32) {
    %c0_i32 = arith.constant 0 : i32
    %c0_i32_0 = arith.constant 0 : i32
    %c0_i32_1 = arith.constant 0 : i32
    return %c0_i32, %c0_i32_0 : i32, i32
  }
  func.func @transform_11(%arg0: i32, %arg1: i32) -> (i32, i32) {
    %c0_i32 = arith.constant 0 : i32
    %c0_i32_0 = arith.constant 0 : i32
    %c0_i32_1 = arith.constant 0 : i32
    return %c0_i32, %c0_i32_0 : i32, i32
  }
  func.func @transform_12(%arg0: i32, %arg1: i32) -> (i32, i32) {
    %c0_i32 = arith.constant 0 : i32
    %c0_i32_0 = arith.constant 0 : i32
    %c0_i32_1 = arith.constant 0 : i32
    return %c0_i32, %c0_i32_0 : i32, i32
  }
  func.func @transform_13(%arg0: i32, %arg1: i32) -> (i32, i32) {
    %c0_i32 = arith.constant 0 : i32
    %c0_i32_0 = arith.constant 0 : i32
    %c0_i32_1 = arith.constant 0 : i32
    return %c0_i32, %c0_i32_0 : i32, i32
  }
  func.func @transform_14(%arg0: i32, %arg1: i32) -> (i32, i32) {
    %c0_i32 = arith.constant 0 : i32
    %c0_i32_0 = arith.constant 0 : i32
    %c0_i32_1 = arith.constant 0 : i32
    return %c0_i32, %c0_i32_0 : i32, i32
  }
  func.func @transform_15(%arg0: i32, %arg1: i32) -> (i32, i32) {
    %c0_i32 = arith.constant 0 : i32
    %c0_i32_0 = arith.constant 0 : i32
    %c0_i32_1 = arith.constant 0 : i32
    return %c0_i32, %c0_i32_0 : i32, i32
  }
  func.func @transform_16(%arg0: i32, %arg1: i32) -> (i32, i32, i32) {
    %c0_i32 = arith.constant 0 : i32
    %c0_i32_0 = arith.constant 0 : i32
    return %arg0, %arg1, %c0_i32 : i32, i32, i32
  }
}

</mosaic_0001>

<bundles_post_ra>
// kernel: mutual_attn_forward.1
= control target key start
LH: loop header
LB: loop body
LE: loop exit
PB: predicated region body
PF: predicated region fallthrough
CT: control target
= control target key end

     0   :  { %s2860_s21 = smov 0   ;;  %s2862_s22 = smov 0   ;;  %s3331_s0 = inlined_call_operand.vmem [shape: f32[2,32,128], index: 0, kind: input, shape index: {}]   ;;  %s3332_s1 = inlined_call_operand.vmem [shape: f32[2,16,128], index: 1, kind: input, shape index: {}]   ;;  %s3333_s2 = inlined_call_operand.vmem [shape: bf16[128,128], index: 2, kind: input, shape index: {}]   ;;  %s3334_s3 = inlined_call_operand.vmem [shape: bf16[128,256], index: 3, kind: input, shape index: {}]   ;;  %s3335_s4 = inlined_call_operand.vmem [shape: bf16[4,32,128], index: 4, kind: input, shape index: {}]   ;;  %s3336_s5 = inlined_call_operand.vmem [shape: bf16[128,256], index: 5, kind: input, shape index: {}]   ;;  %s3337_s6 = inlined_call_operand.vmem [shape: bf16[256,128], index: 6, kind: input, shape index: {}]   ;;  %s3338_s7 = inlined_call_operand.vmem [shape: f32[1,128], index: 7, kind: input, shape index: {}]   ;;  %s3339_s8 = inlined_call_operand.vmem [shape: f32[1,256], index: 8, kind: input, shape index: {}]   ;;  %s3340_s9 = inlined_call_operand.vmem [shape: f32[1,128], index: 9, kind: input, shape index: {}]   ;;  %s3341_s10 = inlined_call_operand.vmem [shape: f32[1,256], index: 10, kind: input, shape index: {}]   ;;  %s3342_s11 = inlined_call_operand.vmem [shape: f32[1,128], index: 11, kind: input, shape index: {}]   ;;  %s3343_s12 = inlined_call_operand.vmem [shape: f32[1,128], index: 12, kind: input, shape index: {}]   ;;  %s3344_s13 = inlined_call_operand.vmem [shape: f32[1,128], index: 13, kind: input, shape index: {}]   ;;  %s3345_s14 = inlined_call_operand.vmem [shape: f32[1,128], index: 14, kind: input, shape index: {}]   ;;  %s3346_s15 = inlined_call_operand.vmem [shape: f32[1,128], index: 15, kind: input, shape index: {}]   ;;  %s3347_s16 = inlined_call_operand.vmem [shape: f32[2,32,128], index: 16, kind: output, shape index: {}]  }
   0x1   :  { %3348 = sst [smem:[#allocation5_spill]] %s3331_s0  ;;  %s2864_s23 = smov 0  }
   0x2   :  { %3349 = sst [smem:[#allocation6_spill]] %s3338_s7  ;;  %s2866_s24 = smov 0  }
   0x3   :  { %3350 = sst [smem:[#allocation7_spill]] %s3340_s9  ;;  %s2868_s25 = smov 0  }
   0x4   :  { %3351 = sst [smem:[#allocation8_spill]] %s3341_s10 }
   0x5   :  { %3352 = sst [smem:[#allocation9_spill]] %s3342_s11 }
   0x6   :  { %3353 = sst [smem:[#allocation10_spill]] %s3343_s12 }
   0x7   :  { %3354 = sst [smem:[#allocation11_spill]] %s3344_s13 }
   0x8   :  { %3355 = sst [smem:[#allocation12_spill]] %s3345_s14 }
   0x9 LB: > { %s35_s26 = sadd.s32 1, %s2743_s23  ;;  %s38_s27 = sadd.s32 1, %s2747_s24  ;;  %s2751_s25 = sphi %s2868_s25, %s26_s25   ;;  %s2747_s24 = sphi %s2866_s24, %s3371_s24   ;;  %s2743_s23 = sphi %s2864_s23, %s3370_s23   ;;  %s2739_s22 = sphi %s2862_s22, %s3369_s22   ;;  %s2735_s21 = sphi %s2860_s21, %s3368_s21  }
   0xa   : > { %p36_p0 = scmp.ge.s32.totalorder %s35_s26, 2  ;;  %p2207_p1 = scmp.ge.s32.totalorder %s2751_s25, 1 }
   0xb   : > { %p493_p2 = scmp.lt.s32.totalorder %s2751_s25, 5 }
   0xc   : > { %s3373_s26 = smov (%p36_p0, %s35_s26), 0  ;;  %s3375_s27 = smov (!%p36_p0, %s38_s27), %s2747_s24 }
   0xd   : > { %p494_p3 = pnand %p2207_p1, %p493_p2  ;;  %p40_p4 = scmp.ge.s32.totalorder %s3375_s27, 2 }
   0xe   : > { %s2208_s28 = sshll.u32 (!%p494_p3), %s2735_s21, 1  ;;  %p557_p5 = scmp.lt.s32.totalorder (!%p494_p3), %s2739_s22, 1  ;;  %v2931_v7 = vld [vmem:[%s3346_s15] ss:$0 sm:$0xff] (!%p494_p3) }
   0xf   : > { %s3377_s27 = smov (%p40_p4, %s3375_s27), 0  ;;  %497 = sbr.rel (%p494_p3) target bundleno = 2834 (0xb12), region = 84 }
  0x10   : > { %3356 = sst [smem:[#allocation4_spill]] %s3377_s27  ;;  %s3357_s7 = sld [smem:[#allocation6_spill]] (!%p494_p3) }
  0x11   : > { %s3358_s9 = sld [smem:[#allocation7_spill]] (!%p494_p3)  ;;  %p559_p6 = scmp.lt.s32.totalorder (!%p494_p3), %s2208_s28, 3 }
  0x12   : > { %s3359_s10 = sld [smem:[#allocation8_spill]] (!%p494_p3)  ;;  %s3360_s11 = sld [smem:[#allocation9_spill]] (!%p494_p3) }
  0x13   : > { %s3361_s12 = sld [smem:[#allocation10_spill]] (!%p494_p3)  ;;  %s3362_s13 = sld [smem:[#allocation11_spill]] (!%p494_p3) }
  0x14   : > { %s3363_s14 = sld [smem:[#allocation12_spill]] (!%p494_p3)  ;;  %p2216_p7 = scmp.ne.s32.totalorder (!%p494_p3), %s2735_s21, 0 }
  0x16   : > { %v2896_v0 = vld [vmem:[%s3357_s7] ss:$0 sm:$0xff]  ;;  %s3379_s22 = smov (!%p557_p5, %s2739_s22), 1  ;;  %s3381_s28 = smov (!%p559_p6, %s2208_s28), 3 }
  0x17   : > { %v2901_v1 = vld [vmem:[%s3358_s9] ss:$0 sm:$0xff]  ;;  %s2209_s7 = sshll.u32 %s3379_s22, 2  ;;  %s2302_s29 = sshll.u32 %s3379_s22, 4  ;;  %v2566_v8 = vld [vmem:[%s3334_s3 + $0x4] ss:$8 sps:$4 sm:$0xff] (!%p2216_p7)   ;;  %v615_v28 = vlaneseq (!%p2216_p7) }
  0x18   : > { %v2906_v2 = vld [vmem:[%s3359_s10] sm:$0x3]  ;;  %s562_s30 = sadd.s32 %s2209_s7, %s3381_s28  ;;  %s2936_s0 = scalar_lea.vmem %s3332_s1, %s2302_s29  ;;  %v2765_v10 = vmov (!%p2216_p7), 0   ;;  %705 = vmatprep.subr.bf16.mxu0 (!%p2216_p7), %v2566_v8  ;;  %v2569_v11 = vld [vmem:[%s3334_s3 + $0x14] ss:$8 sps:$4 sm:$0xff] (!%p2216_p7)   ;;  %vm772_vm0 = vcmask (!%p2216_p7), 261120  }
  0x19   : > { %v2911_v3 = vld [vmem:[%s3360_s11] ss:$0 sm:$0xff]  ;;  %s2210_s17 = sshll.u32 %s562_s30, 3  ;;  %737 = vmatprep.mubr.bf16.mxu0 (!%p2216_p7), %v2765_v10  ;;  %v2571_v12 = vld [vmem:[%s3334_s3 + $0x10] ss:$8 sps:$4 sm:$0xff] (!%p2216_p7)   ;;  %v595_v26 = vld [vmem:[%s2936_s0 + $0x8] sm:$0xff] (!%p2216_p7) }
  0x1a   : > { %v2916_v4 = vld [vmem:[%s3361_s12] ss:$0 sm:$0xff]  ;;  %s2946_s27 = scalar_lea.vmem %s3347_s16, %s2210_s17  ;;  %v2572_v13 = vld [vmem:[%s3334_s3 + $0x24] ss:$8 sps:$4 sm:$0xff] (!%p2216_p7)   ;;  %v2575_v15 = vld [vmem:[%s3334_s3 + $0x34] ss:$8 sps:$4 sm:$0xff] (!%p2216_p7)  }
  0x1b   : > { %v2921_v5 = vld [vmem:[%s3362_s13] ss:$0 sm:$0xff]  ;;  %s3364_s13 = sld [smem:[#allocation5_spill]]  ;;  %593 = sbr.rel (%p2216_p7) target bundleno = 407 (0x197), region = 88  ;;  %v2577_v16 = vld [vmem:[%s3334_s3 + $0x30] ss:$8 sps:$4 sm:$0xff] (!%p2216_p7)  }
  0x1c   : > { %v2926_v6 = vld [vmem:[%s3363_s14] ss:$0 sm:$0xff]  ;;  %v2578_v17 = vld [vmem:[%s3334_s3 + $0x44] ss:$8 sps:$4 sm:$0xff] (!%p2216_p7)   ;;  %v2581_v19 = vld [vmem:[%s3334_s3 + $0x54] ss:$8 sps:$4 sm:$0xff] (!%p2216_p7)  }
  0x1d   : > { %v2568_v9 = vld [vmem:[%s3334_s3] ss:$8 sps:$4 sm:$0xff] (!%p2216_p7)   ;;  %v2583_v20 = vld [vmem:[%s3334_s3 + $0x50] ss:$8 sps:$4 sm:$0xff] (!%p2216_p7)   ;;  %v2584_v21 = vld [vmem:[%s3334_s3 + $0x64] ss:$8 sps:$4 sm:$0xff] (!%p2216_p7)  }
  0x1e   : > { %706 = vmatpush1.bf16.msra.mxu0 (!%p2216_p7), %v2568_v9  ;;  %v2574_v14 = vld [vmem:[%s3334_s3 + $0x20] ss:$8 sps:$4 sm:$0xff] (!%p2216_p7)   ;;  %v2587_v23 = vld [vmem:[%s3334_s3 + $0x74] ss:$8 sps:$4 sm:$0xff] (!%p2216_p7)   ;;  %v2589_v24 = vld [vmem:[%s3334_s3 + $0x70] ss:$8 sps:$4 sm:$0xff] (!%p2216_p7)  }
  0x1f   : > { %707 = vmatprep.subr.bf16.mxu0 (!%p2216_p7), %v2569_v11  ;;  %v2580_v18 = vld [vmem:[%s3334_s3 + $0x40] ss:$8 sps:$4 sm:$0xff] (!%p2216_p7)   ;;  %v616_v29 = vshrl.u32 (!%p2216_p7), %v615_v28, 7  ;;  %s2767_s11 = smov (!%p2216_p7), 96   ;;  %s2768_s12 = smov (!%p2216_p7), 64  }
  0x20   : > { %v2586_v22 = vld [vmem:[%s3334_s3 + $0x60] ss:$8 sps:$4 sm:$0xff] (!%p2216_p7)  }
  0x21   : > { %s2941_s18 = scalar_lea.vmem %s3364_s13, %s2210_s17  ;;  %v594_v25 = vld [vmem:[%s2936_s0] sm:$0xff] (!%p2216_p7)  ;;  %v617_v30 = vsub.s32 (!%p2216_p7), 0, %v616_v29  ;;  %v621_v32 = vsub.s32 (!%p2216_p7), 1, %v616_v29  ;;  %s2766_s0 = smov (!%p2216_p7), 32  }
  0x22   : > { %708 = vmatpush1.bf16.msra.mxu0 %v2571_v12  ;;  %v596_v27 = vpack.c.bf16 %v595_v26, %v594_v25  ;;  %v613_v31 = vld [vmem:[%s3339_s8] sm:$0x3] }
  0x23   : > { %709 = vmatprep.subr.bf16.mxu0 %v2572_v13  ;;  %v618_v33 = vrot.slane %v613_v31, %v617_v30  ;;  %v622_v35 = vrot.slane %v613_v31, %v621_v32 }
  0x26   : > { %710 = vmatpush1.bf16.msra.mxu0 %v2574_v14 }
  0x27   : > { %711 = vmatprep.subr.bf16.mxu0 %v2575_v15 }
  0x2a   : > { %712 = vmatpush1.bf16.msra.mxu0 %v2577_v16 }
  0x2b   : > { %713 = vmatprep.subr.bf16.mxu0 %v2578_v17 }
  0x2e   : > { %714 = vmatpush1.bf16.msra.mxu0 %v2580_v18 }
  0x2f   : > { %715 = vmatprep.subr.bf16.mxu0 %v2581_v19 }
  0x32   : > { %716 = vmatpush1.bf16.msra.mxu0 %v2583_v20 }
  0x33   : > { %717 = vmatprep.subr.bf16.mxu0 %v2584_v21 }
  0x36   : > { %718 = vmatpush1.bf16.msra.mxu0 %v2586_v22 }
  0x37   : > { %719 = vmatprep.subr.bf16.mxu0 %v2587_v23 }
  0x3a   : > { %720 = vmatpush1.bf16.msra.mxu0 %v2589_v24 }
  0x3d   : > { %738 = vmatmul.mubr.bf16.vlgmr.msra.gmra.mrb[0].mxu0 %v596_v27 }
 0x110   : > { %v739_v34 = vpop.f32.mrb[0].mxu0 }
 0x111   : > { %v741_v36 = vpop.f32.mrb[1].mxu0  ;;  %v740_v38 = vadd.f32 %v739_v34, %v618_v33 }
 0x112   : > { %v743_v37 = vpop.f32.mrb[2].mxu0  ;;  %v742_v41 = vadd.f32 %v741_v36, %v622_v35 }
 0x113   : > { %v744_v39 = vadd.f32 %v743_v37, %v618_v33  ;;  %v745_v40 = vpop.f32.mrb[3].mxu0 }
 0x114   : > { %v746_v42 = vadd.f32 %v745_v40, %v622_v35 }
 0x115   : > { %v768_v43 = vpack.c.bf16 %v744_v39, %v740_v38  ;;  %v2546_v44 = vpack.i.bf16 %v744_v39, %v740_v38 }
 0x116   : > { %v797_v45 = vpack.c.bf16 %v746_v42, %v742_v41  ;;  %v2551_v46 = vpack.i.bf16 %v746_v42, %v742_v41 }
 0x117   : > { %773 = vst.msk [vmem:[#allocation2] sm:$0xff] %vm772_vm0, %v768_v43  ;;  %2547 = vrot.lane.b32.xlu1 %v2546_v44, %s2766_s0  ;;  %2537 = vrot.lane.b32.xlu0 %v2546_v44, %s2767_s11 }
 0x118   : > { %801 = vst.msk [vmem:[#allocation3] sm:$0xff] %vm772_vm0, %v797_v45 }
 0x11b   : > { %2552 = vrot.lane.b32.xlu1 %v2551_v46, %s2767_s11  ;;  %2542 = vrot.lane.b32.xlu0 %v2546_v44, %s2768_s12 }
 0x11f   : > { %2562 = vrot.lane.b32.xlu1 %v2551_v46, %s2766_s0  ;;  %2557 = vrot.lane.b32.xlu0 %v2551_v46, %s2768_s12 }
 0x189   : > { %v2548_v47 = vpop.permute.xlu1 %2547  ;;  %v2538_v48 = vpop.permute.xlu0 %2537 }
 0x18a   : > { %v2550_v49 = vunpack.i.h.bf16 %v2548_v47  ;;  %v2549_v50 = vunpack.i.l.bf16 %v2548_v47  ;;  %v2540_v51 = vunpack.i.h.bf16 %v2538_v48  ;;  %v2539_v52 = vunpack.i.l.bf16 %v2538_v48 }
 0x18c   : > { %v771_v53 = vpack.c.bf16 %v2550_v49, %v2549_v50  ;;  %v769_v54 = vpack.c.bf16 %v2540_v51, %v2539_v52 }
 0x18d   : > { %v2553_v55 = vpop.permute.xlu1 %2552  ;;  %v2543_v56 = vpop.permute.xlu0 %2542 }
 0x18e   : > { %776 = vst.msk [vmem:[#allocation2 + $0x18] sm:$0xff] %vm772_vm0, %v771_v53  ;;  %774 = vst.msk [vmem:[#allocation2 + $0x8] sm:$0xff] %vm772_vm0, %v769_v54  ;;  %v2555_v57 = vunpack.i.h.bf16 %v2553_v55  ;;  %v2554_v58 = vunpack.i.l.bf16 %v2553_v55  ;;  %v2545_v59 = vunpack.i.h.bf16 %v2543_v56  ;;  %v2544_v60 = vunpack.i.l.bf16 %v2543_v56 }
 0x190   : > { %v798_v61 = vpack.c.bf16 %v2555_v57, %v2554_v58  ;;  %v770_v62 = vpack.c.bf16 %v2545_v59, %v2544_v60 }
 0x191   : > { %v2563_v63 = vpop.permute.xlu1 %2562  ;;  %v2558_v8 = vpop.permute.xlu0 %2557 }
 0x192   : > { %802 = vst.msk [vmem:[#allocation3 + $0x8] sm:$0xff] %vm772_vm0, %v798_v61  ;;  %775 = vst.msk [vmem:[#allocation2 + $0x10] sm:$0xff] %vm772_vm0, %v770_v62  ;;  %v2565_v9 = vunpack.i.h.bf16 %v2563_v63  ;;  %v2564_v10 = vunpack.i.l.bf16 %v2563_v63  ;;  %v2560_v11 = vunpack.i.h.bf16 %v2558_v8  ;;  %v2559_v12 = vunpack.i.l.bf16 %v2558_v8 }
 0x194   : > { %v800_v13 = vpack.c.bf16 %v2565_v9, %v2564_v10  ;;  %v799_v14 = vpack.c.bf16 %v2560_v11, %v2559_v12 }
 0x196   : > { %804 = vst.msk [vmem:[#allocation3 + $0x18] sm:$0xff] %vm772_vm0, %v800_v13  ;;  %803 = vst.msk [vmem:[#allocation3 + $0x10] sm:$0xff] %vm772_vm0, %v799_v14 }
 0x197 PF: > { %v3010_v15 = vld [vmem:[#allocation2] sm:$0xff]  ;;  %v3012_v16 = vld [vmem:[#allocation2 + $0x8] sm:$0xff]  ;;  %v3016_v18 = vld [vmem:[#allocation2 + $0x18] sm:$0xff]  ;;  %s3032_s13 = smov 0  }
 0x198   : > { %v3018_v19 = vld [vmem:[#allocation3] sm:$0xff]  ;;  %v814_v24 = vld [vmem:[%s2941_s18 + $0x8] sm:$0xff]  }
 0x199   : > { %v3014_v17 = vld [vmem:[#allocation2 + $0x10] sm:$0xff]  ;;  %v3020_v20 = vld [vmem:[#allocation3 + $0x8] sm:$0xff]  ;;  %v813_v23 = vld [vmem:[%s2941_s18] sm:$0xff]  }
 0x19d   : > { %v3022_v21 = vld [vmem:[#allocation3 + $0x10] sm:$0xff]  ;;  %v3024_v22 = vld [vmem:[#allocation3 + $0x18] sm:$0xff] }
 0x19e LB: >> { %v2605_v25 = vld [vmem:[%s3333_s2] sm:$0xff]   ;;  %v2769_v26 = vmov 0.0   ;;  %v2606_v27 = vld [vmem:[%s3333_s2 + $0x8] sm:$0xff]   ;;  %vm2770_vm1 = vmmov 0   ;;  %v2607_v28 = vld [vmem:[%s3333_s2 + $0x10] sm:$0xff]   ;;  %v823_v34 = vpack.c.bf16 %v2755_v24, %v2759_v23  ;;  %vm959_vm2 = vcmask 261120   ;;  %s2763_s13 = sphi %s3032_s13, %s820_s13   ;;  %v2759_v23 = vphi %v813_v23, %v3366_v23   ;;  %v2755_v24 = vphi %v814_v24, %v3365_v24  }
 0x19f   : >> { %2362 = vmatprep.subr.bf16.mxu0 %v2769_v26  ;;  %2382 = vmatprep.subr.bf16.mxu1 %v2769_v26  ;;  %v2608_v29 = vld [vmem:[%s3333_s2 + $0x18] sm:$0xff]   ;;  %v2609_v30 = vld [vmem:[%s3333_s2 + $0x20] sm:$0xff]   ;;  %v2610_v31 = vld [vmem:[%s3333_s2 + $0x28] sm:$0xff]   ;;  %v964_v35 = vsel %vm959_vm2, %v3010_v15, 0  ;;  %v1011_v44 = vsel %vm959_vm2, %v3012_v16, 0  ;;  %s2771_s14 = smov 32  }
 0x1a0   : >> { %2363 = vmatpush3.bf16.msra.mxu0 %v2605_v25  ;;  %2378 = vmatprep.mubr.msk.bf16.mxu0 %vm2770_vm1, %v2769_v26  ;;  %v2611_v32 = vld [vmem:[%s3333_s2 + $0x30] sm:$0xff]   ;;  %v2612_v33 = vld [vmem:[%s3333_s2 + $0x38] sm:$0xff]   ;;  %s2772_s21 = smov 96   ;;  %s2773_s18 = smov 64   ;;  %v1058_v49 = vsel %vm959_vm2, %v3014_v17, 0  ;;  %v1105_v54 = vsel %vm959_vm2, %v3016_v18, 0 }
 0x1a1   : >> { %2364 = vmatprep.subr.bf16.mxu0 %v2769_v26  ;;  %2384 = vmatprep.mubr.msk.bf16.mxu1 %vm2770_vm1, %v2769_v26  ;;  %vm1148_vm3 = vcmask 130048   ;;  %s820_s13 = sadd.s32 1, %s2763_s13  }
 0x1a2   : >> { %2383 = vmatpush3.bf16.xpose.msra.mxu1 %v964_v35  ;;  %p817_p8 = scmp.ge.s32.totalorder %s820_s13, 2  }
 0x1a3   : >> { %2388 = vmatprep.subr.bf16.mxu1 %v2769_v26 }
 0x1a4   : >> { %2365 = vmatpush3.bf16.msra.mxu0 %v2606_v27 }
 0x1a5   : >> { %2366 = vmatprep.subr.bf16.mxu0 %v2769_v26 }
 0x1a8   : >> { %2367 = vmatpush3.bf16.msra.mxu0 %v2607_v28 }
 0x1a9   : >> { %2368 = vmatprep.subr.bf16.mxu0 %v2769_v26 }
 0x1ac   : >> { %2369 = vmatpush3.bf16.msra.mxu0 %v2608_v29 }
 0x1ad   : >> { %2370 = vmatprep.subr.bf16.mxu0 %v2769_v26 }
 0x1b0   : >> { %2371 = vmatpush3.bf16.msra.mxu0 %v2609_v30 }
 0x1b1   : >> { %2372 = vmatprep.subr.bf16.mxu0 %v2769_v26 }
 0x1b4   : >> { %2373 = vmatpush3.bf16.msra.mxu0 %v2610_v31 }
 0x1b5   : >> { %2374 = vmatprep.subr.bf16.mxu0 %v2769_v26 }
 0x1b8   : >> { %2375 = vmatpush3.bf16.msra.mxu0 %v2611_v32 }
 0x1b9   : >> { %2376 = vmatprep.subr.bf16.mxu0 %v2769_v26 }
 0x1bc   : >> { %2377 = vmatpush3.bf16.msra.mxu0 %v2612_v33 }
 0x1bd   : >> { %2406 = vmatprep.subr.bf16.mxu0 %v2769_v26 }
 0x1bf   : >> { %2379 = vmatmul.mubr.bf16.vlgmr.msra.gmra.mrb[0].mxu0 %v823_v34 }
 0x1c0   : >> { %2407 = vmatpush3.bf16.msra.mxu0 %v3018_v19  ;;  %2408 = vmatprep.mubr.msk.bf16.mxu0 %vm2770_vm1, %v2769_v26 }
 0x1c1   : >> { %2418 = vmatprep.subr.bf16.mxu0 %v2769_v26 }
 0x292   : >> { %v928_v36 = vpop.f32.mrb[0].mxu0 }
 0x293   : >> { %v2380_v37 = vpop.f32.mrb[1].mxu0  ;;  %v929_v39 = vadd.f32 %v2896_v0, %v928_v36 }
 0x294   : >> { %v931_v38 = vpop.f32.mrb[2].mxu0 }
 0x295   : >> { %v932_v40 = vadd.f32 %v2896_v0, %v931_v38  ;;  %v2381_v41 = vpop.f32.mrb[3].mxu0 }
 0x297   : >> { %v2600_v42 = vpack.i.bf16 %v932_v40, %v929_v39  ;;  %v955_v43 = vpack.c.bf16 %v932_v40, %v929_v39 }
 0x299   : >> { %2601 = vrot.lane.b32.xlu1 %v2600_v42, %s2771_s14  ;;  %2591 = vrot.lane.b32.xlu0 %v2600_v42, %s2772_s21 }
 0x29a   : >> { %2385 = vmatmul.mubr.msk.bf16.vlgmr.msra.gmra.mrb[0].mxu1 %vm959_vm2, %v955_v43 }
 0x29b   : >> { %2389 = vmatpush3.bf16.xpose.msra.mxu1 %v1011_v44  ;;  %2390 = vmatprep.mubr.msk.bf16.mxu1 %vm2770_vm1, %v2769_v26 }
 0x29c   : >> { %2394 = vmatprep.subr.bf16.mxu1 %v2769_v26 }
 0x29d   : >> { %2596 = vrot.lane.b32.xlu0 %v2600_v42, %s2773_s18 }
 0x30b   : >> { %v2592_v45 = vpop.permute.xlu0 %2591  ;;  %v2602_v55 = vpop.permute.xlu1 %2601 }
 0x30c   : >> { %v2594_v46 = vunpack.i.h.bf16 %v2592_v45  ;;  %v2593_v47 = vunpack.i.l.bf16 %v2592_v45  ;;  %v2604_v56 = vunpack.i.h.bf16 %v2602_v55  ;;  %v2603_v57 = vunpack.i.l.bf16 %v2602_v55 }
 0x30e   : >> { %v956_v48 = vpack.c.bf16 %v2594_v46, %v2593_v47  ;;  %v958_v58 = vpack.c.bf16 %v2604_v56, %v2603_v57 }
 0x30f   : >> { %v2597_v50 = vpop.permute.xlu0 %2596 }
 0x310   : >> { %2391 = vmatmul.mubr.msk.bf16.vlgmr.msra.gmra.mrb[4].mxu1 %vm959_vm2, %v956_v48  ;;  %v2599_v51 = vunpack.i.h.bf16 %v2597_v50  ;;  %v2598_v52 = vunpack.i.l.bf16 %v2597_v50 }
 0x311   : >> { %2395 = vmatpush3.bf16.xpose.msra.mxu1 %v1058_v49  ;;  %2396 = vmatprep.mubr.msk.bf16.mxu1 %vm2770_vm1, %v2769_v26 }
 0x312   : >> { %2400 = vmatprep.subr.bf16.mxu1 %v2769_v26  ;;  %v957_v53 = vpack.c.bf16 %v2599_v51, %v2598_v52 }
 0x318   : >> { %2397 = vmatmul.mubr.msk.bf16.vlgmr.msra.gmra.mrb[8].mxu1 %vm959_vm2, %v957_v53 }
 0x319   : >> { %2401 = vmatpush3.bf16.xpose.msra.mxu1 %v1105_v54  ;;  %2402 = vmatprep.mubr.msk.bf16.mxu1 %vm2770_vm1, %v2769_v26 }
 0x31a   : >> { %2412 = vmatprep.subr.bf16.mxu1 %v2769_v26 }
 0x320   : >> { %2403 = vmatmul.mubr.msk.bf16.vlgmr.msra.gmra.mrb[12].mxu1 %vm959_vm2, %v958_v58 }
 0x321   : >> { %2413 = vmatpush3.bf16.msra.mxu1 %v3020_v20  ;;  %2414 = vmatprep.mubr.msk.bf16.mxu1 %vm2770_vm1, %v2769_v26 }
 0x322   : >> { %2424 = vmatprep.subr.bf16.mxu1 %v2769_v26 }
 0x36d   : >> { %v1000_v59 = vpop.f32.mrb[0].mxu1 }
 0x36e   : >> { %v2386_v60 = vpop.f32.mrb[1].mxu1  ;;  %v1149_v61 = vsel %vm1148_vm3, %v1000_v59, -inf }
 0x36f   : >> { %1150 = vmax.xlane.f32.xlu1 %v1149_v61  ;;  %v1003_v62 = vpop.f32.mrb[2].mxu1 }
 0x370   : >> { %v2387_v63 = vpop.f32.mrb[3].mxu1  ;;  %v1152_v8 = vsel %vm1148_vm3, %v1003_v62, -inf }
 0x371   : >> { %1153 = vmax.xlane.f32.xlu0 %v1152_v8 }
 0x3e3   : >> { %v1047_v9 = vpop.f32.mrb[4].mxu1 }
 0x3e4   : >> { %v2392_v10 = vpop.f32.mrb[5].mxu1  ;;  %v1155_v11 = vsel %vm1148_vm3, %v1047_v9, -inf }
 0x3e5   : >> { %1156 = vmax.xlane.f32.xlu0 %v1155_v11  ;;  %v1050_v12 = vpop.f32.mrb[6].mxu1 }
 0x3e6   : >> { %v2393_v13 = vpop.f32.mrb[7].mxu1  ;;  %v1158_v14 = vsel %vm1148_vm3, %v1050_v12, -inf }
 0x3e7   : >> { %1159 = vmax.xlane.f32.xlu1 %v1158_v14 }
 0x3eb   : >> { %v1094_v25 = vpop.f32.mrb[8].mxu1 }
 0x3ec   : >> { %v2398_v27 = vpop.f32.mrb[9].mxu1  ;;  %v1161_v28 = vsel %vm1148_vm3, %v1094_v25, -inf }
 0x3ed   : >> { %1162 = vmax.xlane.f32.xlu0 %v1161_v28  ;;  %v1097_v29 = vpop.f32.mrb[10].mxu1 }
 0x3ee   : >> { %v2399_v30 = vpop.f32.mrb[11].mxu1  ;;  %v1164_v31 = vsel %vm1148_vm3, %v1097_v29, -inf }
 0x3ef   : >> { %1165 = vmax.xlane.f32.xlu1 %v1164_v31 }
 0x3f3   : >> { %v1141_v32 = vpop.f32.mrb[12].mxu1 }
 0x3f4   : >> { %v2404_v33 = vpop.f32.mrb[13].mxu1  ;;  %v1167_v34 = vsel %vm1148_vm3, %v1141_v32, -inf }
 0x3f5   : >> { %1168 = vmax.xlane.f32.xlu0 %v1167_v34  ;;  %v1144_v35 = vpop.f32.mrb[14].mxu1 }
 0x3f6   : >> { %v2405_v36 = vpop.f32.mrb[15].mxu1  ;;  %v1170_v37 = vsel %vm1148_vm3, %v1144_v35, -inf }
 0x3f7   : >> { %1171 = vmax.xlane.f32.xlu1 %v1170_v37 }
 0x3fc   : >> { %v1151_v38 = vpop.xlane.xlu1 %1150 }
 0x3fd   : >> { %v1173_v39 = vsub.f32 %v1000_v59, %v1151_v38 }
 0x3fe   : >> { %v1154_v40 = vpop.xlane.xlu0 %1153 }
 0x3ff   : >> { %v1181_v41 = vmul.f32 1.442695, %v1173_v39  ;;  %v1174_v42 = vsub.f32 %v1003_v62, %v1154_v40 }
 0x401   : >> { %2661 = vpow2.f32 %v1181_v41  ;;  %v1183_v43 = vmul.f32 1.442695, %v1174_v42 }
 0x403   : >> { %2663 = vpow2.f32 %v1183_v43 }
 0x40b   : >> { %v2662_v44 = vpop.eup %2661 }
 0x40c   : >> { %v1197_v45 = vsel %vm1148_vm3, %v2662_v44, 0.0 }
 0x40d   : >> { %v2664_v46 = vpop.eup %2663  ;;  %1198 = vadd.xlane.f32.xlu0 %v1197_v45 }
 0x40e   : >> { %v1200_v47 = vsel %vm1148_vm3, %v2664_v46, 0.0 }
 0x40f   : >> { %1201 = vadd.xlane.f32.xlu1 %v1200_v47 }
 0x472   : >> { %v1157_v48 = vpop.xlane.xlu0 %1156 }
 0x473   : >> { %v1175_v49 = vsub.f32 %v1047_v9, %v1157_v48 }
 0x474   : >> { %v1160_v50 = vpop.xlane.xlu1 %1159 }
 0x475   : >> { %v1185_v51 = vmul.f32 1.442695, %v1175_v49  ;;  %v1176_v52 = vsub.f32 %v1050_v12, %v1160_v50 }
 0x477   : >> { %2665 = vpow2.f32 %v1185_v51  ;;  %v1187_v53 = vmul.f32 1.442695, %v1176_v52 }
 0x479   : >> { %2667 = vpow2.f32 %v1187_v53 }
 0x47a   : >> { %v1163_v54 = vpop.xlane.xlu0 %1162 }
 0x47b   : >> { %v1177_v55 = vsub.f32 %v1094_v25, %v1163_v54 }
 0x47c   : >> { %v1166_v56 = vpop.xlane.xlu1 %1165 }
 0x47d   : >> { %v1189_v57 = vmul.f32 1.442695, %v1177_v55  ;;  %v1178_v58 = vsub.f32 %v1097_v29, %v1166_v56  ;;  %v2613_v55 = vld [vmem:[%s3335_s4] sm:$0xff]  }
 0x47f   : >> { %2669 = vpow2.f32 %v1189_v57  ;;  %v1191_v59 = vmul.f32 1.442695, %v1178_v58  ;;  %v2614_v58 = vld [vmem:[%s3335_s4 + $0x8] sm:$0xff]  }
 0x481   : >> { %v2666_v60 = vpop.eup %2665  ;;  %2671 = vpow2.f32 %v1191_v59 }
 0x482   : >> { %v1169_v61 = vpop.xlane.xlu0 %1168  ;;  %v1203_v62 = vsel %vm1148_vm3, %v2666_v60, 0.0 }
 0x483   : >> { %v2668_v63 = vpop.eup %2667  ;;  %v1179_v8 = vsub.f32 %v1141_v32, %v1169_v61  ;;  %1204 = vadd.xlane.f32.xlu0 %v1203_v62  ;;  %v2615_v62 = vld [vmem:[%s3335_s4 + $0x10] sm:$0xff]  }
 0x484   : >> { %v1172_v9 = vpop.xlane.xlu1 %1171  ;;  %v1206_v10 = vsel %vm1148_vm3, %v2668_v63, 0.0 }
 0x485   : >> { %v1193_v11 = vmul.f32 1.442695, %v1179_v8  ;;  %v1180_v12 = vsub.f32 %v1144_v35, %v1172_v9  ;;  %1207 = vadd.xlane.f32.xlu1 %v1206_v10  ;;  %v2616_v8 = vld [vmem:[%s3335_s4 + $0x18] sm:$0xff]  }
 0x487   : >> { %2673 = vpow2.f32 %v1193_v11  ;;  %v1195_v13 = vmul.f32 1.442695, %v1180_v12  ;;  %v2617_v12 = vld [vmem:[%s3335_s4 + $0x20] sm:$0xff]  }
 0x489   : >> { %v2670_v14 = vpop.eup %2669  ;;  %2675 = vpow2.f32 %v1195_v13 }
 0x48a   : >> { %v1209_v25 = vsel %vm1148_vm3, %v2670_v14, 0.0 }
 0x48b   : >> { %v2672_v27 = vpop.eup %2671  ;;  %1210 = vadd.xlane.f32.xlu0 %v1209_v25  ;;  %v2618_v25 = vld [vmem:[%s3335_s4 + $0x28] sm:$0xff]  }
 0x48c   : >> { %v1212_v28 = vsel %vm1148_vm3, %v2672_v27, 0.0 }
 0x48d   : >> { %1213 = vadd.xlane.f32.xlu1 %v1212_v28 }
 0x491   : >> { %v2674_v29 = vpop.eup %2673 }
 0x492   : >> { %v1215_v30 = vsel %vm1148_vm3, %v2674_v29, 0.0 }
 0x493   : >> { %v2676_v31 = vpop.eup %2675  ;;  %1216 = vadd.xlane.f32.xlu0 %v1215_v30  ;;  %v2619_v30 = vld [vmem:[%s3335_s4 + $0x30] sm:$0xff]  }
 0x494   : >> { %v1218_v32 = vsel %vm1148_vm3, %v2676_v31, 0.0 }
 0x495   : >> { %1219 = vadd.xlane.f32.xlu1 %v1218_v32 }
 0x49a   : >> { %v1199_v33 = vpop.xlane.xlu0 %1198 }
 0x49b   : >> { %2677 = vrcp.f32 %v1199_v33  ;;  %v2620_v33 = vld [vmem:[%s3335_s4 + $0x38] sm:$0xff]  }
 0x49c   : >> { %v1202_v34 = vpop.xlane.xlu1 %1201 }
 0x49d   : >> { %2679 = vrcp.f32 %v1202_v34 }
 0x4a5   : >> { %v2678_v35 = vpop.eup %2677 }
 0x4a6   : >> { %v1229_v37 = vmul.f32 %v2678_v35, %v2662_v44 }
 0x4a7   : >> { %v2680_v36 = vpop.eup %2679 }
 0x4a8   : >> { %v1230_v38 = vmul.f32 %v2680_v36, %v2664_v46 }
 0x4aa   : >> { %v1237_v39 = vpack.c.bf16 %v1230_v38, %v1229_v37 }
 0x4ac   : >> { %2409 = vmatmul.mubr.msk.bf16.vlgmr.msra.gmra.mrb[4].mxu0 %vm1148_vm3, %v1237_v39 }
 0x4ad   : >> { %2419 = vmatpush3.bf16.msra.mxu0 %v3022_v21  ;;  %2420 = vmatprep.mubr.msk.bf16.mxu0 %vm2770_vm1, %v2769_v26 }
 0x4ae   : >> { %2430 = vmatprep.subr.bf16.mxu0 %v2769_v26 }
 0x510   : >> { %v1205_v40 = vpop.xlane.xlu0 %1204 }
 0x511   : >> { %2681 = vrcp.f32 %v1205_v40 }
 0x512   : >> { %v1208_v41 = vpop.xlane.xlu1 %1207 }
 0x513   : >> { %2683 = vrcp.f32 %v1208_v41 }
 0x518   : >> { %v1211_v42 = vpop.xlane.xlu0 %1210 }
 0x519   : >> { %2685 = vrcp.f32 %v1211_v42 }
 0x51a   : >> { %v1214_v43 = vpop.xlane.xlu1 %1213 }
 0x51b   : >> { %v2682_v45 = vpop.eup %2681  ;;  %2687 = vrcp.f32 %v1214_v43 }
 0x51c   : >> { %v1231_v46 = vmul.f32 %v2682_v45, %v2666_v60 }
 0x51d   : >> { %v2684_v44 = vpop.eup %2683 }
 0x51e   : >> { %v1232_v47 = vmul.f32 %v2684_v44, %v2668_v63 }
 0x520   : >> { %v1217_v48 = vpop.xlane.xlu0 %1216  ;;  %v1238_v49 = vpack.c.bf16 %v1232_v47, %v1231_v46 }
 0x521   : >> { %2689 = vrcp.f32 %v1217_v48 }
 0x522   : >> { %2415 = vmatmul.mubr.msk.bf16.vlgmr.msra.gmra.mrb[16].mxu1 %vm1148_vm3, %v1238_v49  ;;  %v1220_v50 = vpop.xlane.xlu1 %1219 }
 0x523   : >> { %v2686_v51 = vpop.eup %2685  ;;  %2691 = vrcp.f32 %v1220_v50  ;;  %2425 = vmatpush3.bf16.msra.mxu1 %v3024_v22  ;;  %2426 = vmatprep.mubr.msk.bf16.mxu1 %vm2770_vm1, %v2769_v26 }
 0x524   : >> { %2438 = vmatprep.subr.bf16.mxu1 %v2769_v26  ;;  %v1233_v53 = vmul.f32 %v2686_v51, %v2670_v14 }
 0x525   : >> { %v2688_v52 = vpop.eup %2687 }
 0x526   : >> { %v1234_v54 = vmul.f32 %v2688_v52, %v2672_v27 }
 0x528   : >> { %v1239_v56 = vpack.c.bf16 %v1234_v54, %v1233_v53 }
 0x52a   : >> { %2421 = vmatmul.mubr.msk.bf16.vlgmr.msra.gmra.mrb[8].mxu0 %vm1148_vm3, %v1239_v56 }
 0x52b   : >> { %v2690_v57 = vpop.eup %2689  ;;  %2431 = vmatpush3.bf16.msra.mxu0 %v2613_v55  ;;  %2434 = vmatprep.mubr.msk.bf16.mxu0 %vm2770_vm1, %v2769_v26 }
 0x52c   : >> { %2432 = vmatprep.subr.bf16.mxu0 %v2769_v26  ;;  %v1235_v60 = vmul.f32 %v2690_v57, %v2674_v29 }
 0x52d   : >> { %v2692_v59 = vpop.eup %2691 }
 0x52e   : >> { %v1236_v61 = vmul.f32 %v2692_v59, %v2676_v31 }
 0x52f   : >> { %2433 = vmatpush3.bf16.msra.mxu0 %v2614_v58 }
 0x530   : >> { %v1240_v63 = vpack.c.bf16 %v1236_v61, %v1235_v60  ;;  %2446 = vmatprep.subr.bf16.mxu0 %v2769_v26 }
 0x532   : >> { %2427 = vmatmul.mubr.msk.bf16.vlgmr.msra.gmra.mrb[20].mxu1 %vm1148_vm3, %v1240_v63 }
 0x533   : >> { %2439 = vmatpush3.bf16.msra.mxu1 %v2615_v62  ;;  %2442 = vmatprep.mubr.msk.bf16.mxu1 %vm2770_vm1, %v2769_v26 }
 0x534   : >> { %2440 = vmatprep.subr.bf16.mxu1 %v2769_v26 }
 0x537   : >> { %2441 = vmatpush3.bf16.msra.mxu1 %v2616_v8 }
 0x538   : >> { %2454 = vmatprep.subr.bf16.mxu1 %v2769_v26 }
 0x57f   : >> { %v1278_v9 = vpop.f32.mrb[4].mxu0 }
 0x580   : >> { %v2410_v10 = vpop.f32.mrb[5].mxu0 }
 0x581   : >> { %v1281_v11 = vpop.f32.mrb[6].mxu0 }
 0x582   : >> { %v1417_v13 = vpack.c.bf16 %v1281_v11, %v1278_v9  ;;  %v2411_v14 = vpop.f32.mrb[7].mxu0 }
 0x583   : >> { %v2623_v14 = vld [vmem:[%s3336_s5 + $0x4] ss:$8 sps:$4 sm:$0xff]  }
 0x584   : >> { %2435 = vmatmul.mubr.msk.bf16.vlgmr.msra.gmra.mrb[12].mxu0 %vm959_vm2, %v1417_v13  ;;  %v2621_v13 = vld [vmem:[%s3336_s5] ss:$8 sps:$4 sm:$0xff]  }
 0x585   : >> { %2447 = vmatpush3.bf16.msra.mxu0 %v2617_v12  ;;  %2450 = vmatprep.mubr.msk.bf16.mxu0 %vm2770_vm1, %v2769_v26 }
 0x586   : >> { %2448 = vmatprep.subr.bf16.mxu0 %v2769_v26 }
 0x589   : >> { %2449 = vmatpush3.bf16.msra.mxu0 %v2618_v25  ;;  %v2626_v25 = vld [vmem:[%s3336_s5 + $0x14] ss:$8 sps:$4 sm:$0xff]  }
 0x58a   : >> { %1824 = vmatprep.subr.bf16.mxu0 %v2623_v14 }
 0x5f5   : >> { %v1322_v27 = vpop.f32.mrb[16].mxu1 }
 0x5f6   : >> { %v2416_v28 = vpop.f32.mrb[17].mxu1 }
 0x5f7   : >> { %v1325_v29 = vpop.f32.mrb[18].mxu1 }
 0x5f8   : >> { %v1418_v31 = vpack.c.bf16 %v1325_v29, %v1322_v27  ;;  %v2417_v32 = vpop.f32.mrb[19].mxu1 }
 0x5fa   : >> { %2443 = vmatmul.mubr.msk.bf16.vlgmr.msra.gmra.mrb[24].mxu1 %vm959_vm2, %v1418_v31 }
 0x5fb   : >> { %2455 = vmatpush3.bf16.msra.mxu1 %v2619_v30  ;;  %2458 = vmatprep.mubr.msk.bf16.mxu1 %vm2770_vm1, %v2769_v26 }
 0x5fc   : >> { %2456 = vmatprep.subr.bf16.mxu1 %v2769_v26 }
 0x5fd   : >> { %v1366_v34 = vpop.f32.mrb[8].mxu0 }
 0x5fe   : >> { %v2422_v35 = vpop.f32.mrb[9].mxu0 }
 0x5ff   : >> { %v1369_v36 = vpop.f32.mrb[10].mxu0  ;;  %2457 = vmatpush3.bf16.msra.mxu1 %v2620_v33  ;;  %v2627_v35 = vld [vmem:[%s3336_s5 + $0x20] ss:$8 sps:$4 sm:$0xff]  }
 0x600   : >> { %v1419_v37 = vpack.c.bf16 %v1369_v36, %v1366_v34  ;;  %v2423_v38 = vpop.f32.mrb[11].mxu0  ;;  %v2629_v34 = vld [vmem:[%s3336_s5 + $0x24] ss:$8 sps:$4 sm:$0xff]   ;;  %v2632_v36 = vld [vmem:[%s3336_s5 + $0x34] ss:$8 sps:$4 sm:$0xff]  }
 0x601   : >> { %v2635_v38 = vld [vmem:[%s3336_s5 + $0x44] ss:$8 sps:$4 sm:$0xff]  }
 0x602   : >> { %2451 = vmatmul.mubr.msk.bf16.vlgmr.msra.gmra.mrb[16].mxu0 %vm959_vm2, %v1419_v37  ;;  %v2630_v37 = vld [vmem:[%s3336_s5 + $0x30] ss:$8 sps:$4 sm:$0xff]  }
 0x603   : >> { %1825 = vmatpush1.bf16.msra.mxu0 %v2621_v13 }
 0x604   : >> { %1826 = vmatprep.subr.bf16.mxu0 %v2626_v25 }
 0x605   : >> { %v1410_v39 = vpop.f32.mrb[20].mxu1 }
 0x606   : >> { %v2428_v40 = vpop.f32.mrb[21].mxu1 }
 0x607   : >> { %v1413_v41 = vpop.f32.mrb[22].mxu1  ;;  %v2638_v40 = vld [vmem:[%s3336_s5 + $0x54] ss:$8 sps:$4 sm:$0xff]  }
 0x608   : >> { %v1420_v42 = vpack.c.bf16 %v1413_v41, %v1410_v39  ;;  %v2429_v43 = vpop.f32.mrb[23].mxu1  ;;  %v2633_v39 = vld [vmem:[%s3336_s5 + $0x40] ss:$8 sps:$4 sm:$0xff]   ;;  %v2774_v41 = vmov 0  }
 0x609   : >> { %1856 = vmatprep.mubr.bf16.mxu0 %v2774_v41  ;;  %v2641_v43 = vld [vmem:[%s3336_s5 + $0x64] ss:$8 sps:$4 sm:$0xff]  }
 0x60a   : >> { %2459 = vmatmul.mubr.msk.bf16.vlgmr.msra.gmra.mrb[28].mxu1 %vm959_vm2, %v1420_v42  ;;  %v2636_v42 = vld [vmem:[%s3336_s5 + $0x50] ss:$8 sps:$4 sm:$0xff]  }
 0x657   : >> { %v1486_v45 = vpop.f32.mrb[12].mxu0 }
 0x658   : >> { %v2436_v44 = vpop.f32.mrb[13].mxu0 }
 0x659   : >> { %v1489_v46 = vpop.f32.mrb[14].mxu0  ;;  %v2644_v44 = vld [vmem:[%s3336_s5 + $0x74] ss:$8 sps:$4 sm:$0xff]  }
 0x65a   : >> { %v2437_v47 = vpop.f32.mrb[15].mxu0 }
 0x65b   : >> { %v2645_v47 = vld [vmem:[%s3337_s6 + $0x40] sm:$0xff]  }
 0x65c   : >> { %2340 = vmatprep.subr.bf16.mxu1 %v2645_v47 }
 0x6cd   : >> { %v1542_v26 = vpop.f32.mrb[24].mxu1 }
 0x6ce   : >> { %v1661_v48 = vadd.f32 %v1542_v26, %v1486_v45  ;;  %v2444_v49 = vpop.f32.mrb[25].mxu1  ;;  %v2639_v45 = vld [vmem:[%s3336_s5 + $0x60] ss:$8 sps:$4 sm:$0xff]  }
 0x6cf   : >> { %v1545_v50 = vpop.f32.mrb[26].mxu1  ;;  %v2646_v26 = vld [vmem:[%s3337_s6] sm:$0xff]   ;;  %v2648_v49 = vld [vmem:[%s3337_s6 + $0x8] sm:$0xff]  }
 0x6d0   : >> { %v1664_v51 = vadd.f32 %v1545_v50, %v1489_v46  ;;  %v2445_v52 = vpop.f32.mrb[27].mxu1  ;;  %v2642_v46 = vld [vmem:[%s3336_s5 + $0x70] ss:$8 sps:$4 sm:$0xff]   ;;  %2341 = vmatpush3.bf16.msra.mxu1 %v2646_v26 }
 0x6d1   : >> { %v2649_v50 = vld [vmem:[%s3337_s6 + $0x50] sm:$0xff]   ;;  %v2651_v52 = vld [vmem:[%s3337_s6 + $0x58] sm:$0xff]  }
 0x6d5   : >> { %v1598_v53 = vpop.f32.mrb[16].mxu0 }
 0x6d6   : >> { %v1662_v54 = vadd.f32 %v1661_v48, %v1598_v53  ;;  %v2452_v55 = vpop.f32.mrb[17].mxu0  ;;  %v2647_v48 = vld [vmem:[%s3337_s6 + $0x48] sm:$0xff]   ;;  %v2652_v53 = vld [vmem:[%s3337_s6 + $0x18] sm:$0xff]  }
 0x6d7   : >> { %v1601_v56 = vpop.f32.mrb[18].mxu0  ;;  %2342 = vmatprep.subr.bf16.mxu1 %v2647_v48  ;;  %v2654_v55 = vld [vmem:[%s3337_s6 + $0x20] sm:$0xff]  }
 0x6d8   : >> { %v1665_v57 = vadd.f32 %v1664_v51, %v1601_v56  ;;  %v2453_v58 = vpop.f32.mrb[19].mxu0  ;;  %2343 = vmatpush3.bf16.msra.mxu1 %v2648_v49  ;;  %v2650_v51 = vld [vmem:[%s3337_s6 + $0x10] sm:$0xff]   ;;  %v2655_v56 = vld [vmem:[%s3337_s6 + $0x68] sm:$0xff]  }
 0x6d9   : >> { %2344 = vmatprep.subr.bf16.mxu1 %v2649_v50 }
 0x6dc   : >> { %2345 = vmatpush3.bf16.msra.mxu1 %v2650_v51 }
 0x6dd   : >> { %v1654_v59 = vpop.f32.mrb[28].mxu1  ;;  %2346 = vmatprep.subr.bf16.mxu1 %v2651_v52 }
 0x6de   : >> { %v1663_v60 = vadd.f32 %v1662_v54, %v1654_v59  ;;  %v2460_v61 = vpop.f32.mrb[29].mxu1  ;;  %v2653_v54 = vld [vmem:[%s3337_s6 + $0x60] sm:$0xff]  }
 0x6df   : >> { %v1657_v62 = vpop.f32.mrb[30].mxu1 }
 0x6e0   : >> { %v1673_v63 = vadd.f32 %v2901_v1, %v1663_v60  ;;  %v1666_v8 = vadd.f32 %v1665_v57, %v1657_v62  ;;  %v2461_v9 = vpop.f32.mrb[31].mxu1  ;;  %2347 = vmatpush3.bf16.msra.mxu1 %v2652_v53 }
 0x6e1   : >> { %2348 = vmatprep.subr.bf16.mxu1 %v2653_v54 }
 0x6e2   : >> { %v1674_v10 = vadd.f32 %v2901_v1, %v1666_v8  ;;  %v1675_v11 = vadd.f32 %v2759_v23, %v1673_v63  ;;  %v2624_v23 = vld [vmem:[%s3336_s5 + $0x10] ss:$8 sps:$4 sm:$0xff]  }
 0x6e3   : >> { %1827 = vmatpush1.bf16.msra.mxu0 %v2624_v23  ;;  %v2656_v23 = vld [vmem:[%s3337_s6 + $0x28] sm:$0xff]  }
 0x6e4   : >> { %1677 = vadd.xlane.f32.xlu0 %v1675_v11  ;;  %v1676_v12 = vadd.f32 %v2755_v24, %v1674_v10  ;;  %1828 = vmatprep.subr.bf16.mxu0 %v2629_v34 }
 0x6e5   : >> { %2349 = vmatpush3.bf16.msra.mxu1 %v2654_v55 }
 0x6e6   : >> { %1679 = vadd.xlane.f32.xlu1 %v1676_v12  ;;  %2350 = vmatprep.subr.bf16.mxu1 %v2655_v56 }
 0x6e7   : >> { %1829 = vmatpush1.bf16.msra.mxu0 %v2627_v35 }
 0x6e8   : >> { %1830 = vmatprep.subr.bf16.mxu0 %v2632_v36 }
 0x6e9   : >> { %2351 = vmatpush3.bf16.msra.mxu1 %v2656_v23 }
 0x6eb   : >> { %1831 = vmatpush1.bf16.msra.mxu0 %v2630_v37 }
 0x6ec   : >> { %1832 = vmatprep.subr.bf16.mxu0 %v2635_v38 }
 0x6ef   : >> { %1833 = vmatpush1.bf16.msra.mxu0 %v2633_v39 }
 0x6f0   : >> { %1834 = vmatprep.subr.bf16.mxu0 %v2638_v40 }
 0x6f3   : >> { %1835 = vmatpush1.bf16.msra.mxu0 %v2636_v42 }
 0x6f4   : >> { %1836 = vmatprep.subr.bf16.mxu0 %v2641_v43 }
 0x6f7   : >> { %1837 = vmatpush1.bf16.msra.mxu0 %v2639_v45 }
 0x6f8   : >> { %1838 = vmatprep.subr.bf16.mxu0 %v2644_v44 }
 0x6fb   : >> { %1839 = vmatpush1.bf16.msra.mxu0 %v2642_v46 }
 0x771   : >> { %v1678_v24 = vpop.xlane.xlu0 %1677 }
 0x772   : >> { %v1682_v27 = vmul.f32 0.0078125, %v1678_v24  ;;  %v2657_v24 = vld [vmem:[%s3337_s6 + $0x70] sm:$0xff]  }
 0x773   : >> { %v1680_v28 = vpop.xlane.xlu1 %1679  ;;  %2352 = vmatprep.subr.bf16.mxu1 %v2657_v24 }
 0x774   : >> { %v3201_v29 = vsub.f32 %v1675_v11, %v1682_v27  ;;  %v1683_v30 = vmul.f32 0.0078125, %v1680_v28  ;;  %v2658_v27 = vld [vmem:[%s3337_s6 + $0x30] sm:$0xff]   ;;  %v2659_v28 = vld [vmem:[%s3337_s6 + $0x78] sm:$0xff]  }
 0x775   : >> { %2353 = vmatpush3.bf16.msra.mxu1 %v2658_v27 }
 0x776   : >> { %v3203_v31 = vsub.f32 %v1676_v12, %v1683_v30  ;;  %v1686_v32 = vmul.f32 %v3201_v29, %v3201_v29  ;;  %2354 = vmatprep.subr.bf16.mxu1 %v2659_v28  ;;  %v1734_v30 = vlaneseq }
 0x778   : >> { %1688 = vadd.xlane.f32.xlu0 %v1686_v32  ;;  %v1687_v33 = vmul.f32 %v3203_v31, %v3203_v31 }
 0x77a   : >> { %1690 = vadd.xlane.f32.xlu1 %v1687_v33 }
 0x805   : >> { %v1689_v57 = vpop.xlane.xlu0 %1688 }
 0x806   : >> { %v1692_v58 = vmul.f32 0.0078125, %v1689_v57 }
 0x807   : >> { %v1691_v59 = vpop.xlane.xlu1 %1690 }
 0x808   : >> { %v1694_v60 = vadd.f32 1e-05, %v1692_v58  ;;  %v1693_v61 = vmul.f32 0.0078125, %v1691_v59 }
 0x80a   : >> { %2693 = vrsqrt.f32 %v1694_v60  ;;  %v1695_v62 = vadd.f32 1e-05, %v1693_v61 }
 0x80c   : >> { %2695 = vrsqrt.f32 %v1695_v62 }
 0x814   : >> { %v2694_v63 = vpop.eup %2693 }
 0x815   : >> { %v1698_v8 = vmul.f32 %v2694_v63, %v3201_v29  ;;  %v2660_v29 = vld [vmem:[%s3337_s6 + $0x38] sm:$0xff]  }
 0x816   : >> { %v2696_v9 = vpop.eup %2695  ;;  %2355 = vmatpush3.bf16.msra.mxu1 %v2660_v29 }
 0x817   : >> { %v1699_v10 = vmul.f32 %v2696_v9, %v3203_v31  ;;  %v1706_v11 = vmul.f32 %v2916_v4, %v1698_v8  ;;  %v1735_v31 = vshrl.u32 %v1734_v30, 7 }
 0x819   : >> { %v1707_v12 = vmul.f32 %v2916_v4, %v1699_v10  ;;  %v1714_v13 = vadd.f32 %v2921_v5, %v1706_v11  ;;  %v1736_v32 = vsub.s32 0, %v1735_v31  ;;  %v1740_v33 = vsub.s32 1, %v1735_v31 }
 0x81b   : >> { %v1715_v14 = vadd.f32 %v2921_v5, %v1707_v12  ;;  %v1737_v34 = vrot.slane %v2906_v2, %v1736_v32  ;;  %v1741_v35 = vrot.slane %v2906_v2, %v1740_v33 }
 0x81d   : >> { %v1716_v25 = vpack.c.bf16 %v1715_v14, %v1714_v13 }
 0x81f   : >> { %1857 = vmatmul.mubr.bf16.vlgmr.msra.gmra.mrb[20].mxu0 %v1716_v25 }
 0x8f2   : >> { %v1858_v36 = vpop.f32.mrb[20].mxu0 }
 0x8f3   : >> { %v1859_v37 = vadd.f32 %v1858_v36, %v1737_v34  ;;  %v1860_v38 = vpop.f32.mrb[21].mxu0 }
 0x8f4   : >> { %v1861_v39 = vadd.f32 %v1860_v38, %v1741_v35  ;;  %v1862_v40 = vpop.f32.mrb[22].mxu0 }
 0x8f5   : >> { %v1863_v41 = vadd.f32 %v1862_v40, %v1737_v34  ;;  %v1864_v42 = vpop.f32.mrb[23].mxu0  ;;  %v1867_v45 = vmax.f32 %v1859_v37, 0.0 }
 0x8f6   : >> { %v1865_v43 = vadd.f32 %v1864_v42, %v1741_v35  ;;  %v1868_v46 = vmax.f32 %v1861_v39, 0.0 }
 0x8f7   : >> { %v1869_v44 = vmax.f32 %v1863_v41, 0.0 }
 0x8f8   : >> { %v1870_v47 = vmax.f32 %v1865_v43, 0.0 }
 0x8f9   : >> { %v1871_v26 = vpack.c.bf16 %v1869_v44, %v1867_v45 }
 0x8fa   : >> { %v1872_v48 = vpack.c.bf16 %v1870_v47, %v1868_v46 }
 0x8fc   : >> { %2039 = vmatprep.mubr.bf16.mxu1 %v1872_v48 }
 0x8fd   : >> { %2040 = vmatmul.mubr.bf16.vlgmr.msra.gmra.mrb[32].mxu1 %v1871_v26 }
 0x9d0   : >> { %v2356_v49 = vpop.f32.mrb[32].mxu1 }
 0x9d1   : >> { %v2357_v50 = vpop.f32.mrb[33].mxu1 }
 0x9d2   : >> { %v2358_v51 = vadd.f32 %v2357_v50, %v2356_v49  ;;  %v2359_v52 = vpop.f32.mrb[34].mxu1 }
 0x9d3   : >> { %v2360_v53 = vpop.f32.mrb[35].mxu1 }
 0x9d4   : >> { %v2042_v54 = vadd.f32 %v2358_v51, %v2911_v3  ;;  %v2361_v55 = vadd.f32 %v2360_v53, %v2359_v52 }
 0x9d6   : >> { %v2045_v56 = vadd.f32 %v2361_v55, %v2911_v3  ;;  %v2048_v57 = vadd.f32 %v2042_v54, %v1714_v13 }
 0x9d8   : >> { %2050 = vadd.xlane.f32.xlu0 %v2048_v57  ;;  %v2049_v58 = vadd.f32 %v2045_v56, %v1715_v14 }
 0x9da   : >> { %2052 = vadd.xlane.f32.xlu1 %v2049_v58 }
 0xa65   : >> { %v2051_v59 = vpop.xlane.xlu0 %2050 }
 0xa66   : >> { %v2054_v60 = vmul.f32 0.0078125, %v2051_v59 }
 0xa67   : >> { %v2053_v61 = vpop.xlane.xlu1 %2052 }
 0xa68   : >> { %v2056_v62 = vsub.f32 %v2048_v57, %v2054_v60  ;;  %v2055_v63 = vmul.f32 0.0078125, %v2053_v61 }
 0xa6a   : >> { %v2057_v8 = vsub.f32 %v2049_v58, %v2055_v63  ;;  %v2058_v9 = vmul.f32 %v2056_v62, %v2056_v62 }
 0xa6c   : >> { %2060 = vadd.xlane.f32.xlu0 %v2058_v9  ;;  %v2059_v10 = vmul.f32 %v2057_v8, %v2057_v8 }
 0xa6e   : >> { %2062 = vadd.xlane.f32.xlu1 %v2059_v10 }
 0xaf9   : >> { %v2061_v11 = vpop.xlane.xlu0 %2060 }
 0xafa   : >> { %v2064_v12 = vmul.f32 0.0078125, %v2061_v11 }
 0xafb   : >> { %v2063_v25 = vpop.xlane.xlu1 %2062 }
 0xafc   : >> { %v2066_v23 = vadd.f32 1e-05, %v2064_v12  ;;  %v2065_v24 = vmul.f32 0.0078125, %v2063_v25 }
 0xafe   : >> { %2697 = vrsqrt.f32 %v2066_v23  ;;  %v2067_v13 = vadd.f32 1e-05, %v2065_v24 }
 0xb00   : >> { %2699 = vrsqrt.f32 %v2067_v13 }
 0xb08   : >> { %v2698_v14 = vpop.eup %2697 }
 0xb09   : >> { %v2070_v27 = vmul.f32 %v2698_v14, %v2056_v62 }
 0xb0a   : >> { %v2700_v28 = vpop.eup %2699 }
 0xb0b   : >> { %v2078_v29 = vmul.f32 %v2926_v6, %v2070_v27  ;;  %v2071_v30 = vmul.f32 %v2700_v28, %v2057_v8  ;;  %819 = sbr.rel (!%p817_p8) target bundleno = 414 (0x19e), region = 128 }
 0xb0d   : >> { %v2086_v31 = vadd.f32 %v2931_v7, %v2078_v29   ;;  %v2079_v32 = vmul.f32 %v2926_v6, %v2071_v30 }
 0xb0f   : >> { %v2087_v33 = vadd.f32 %v2931_v7, %v2079_v32   ;;  %v3366_v23 = vmov %v2086_v31  ;;  %2088 = vst [vmem:[%s2946_s27] sm:$0xff] (%p817_p8), %v2086_v31 }
 0xb11   : >> { %v3365_v24 = vmov %v2087_v33  ;;  %2089 = vst [vmem:[%s2946_s27 + $0x8] sm:$0xff] (%p817_p8), %v2087_v33 }
 0xb12 PF: > { %s26_s25 = sadd.s32 1, %s2751_s25   ;;  %s3367_s28 = sld [smem:[#allocation4_spill]] }
 0xb13   : > { %p23_p9 = scmp.ge.s32.totalorder %s26_s25, 6   ;;  %s3368_s21 = smov %s2743_s23 }
 0xb14   : > { %s3369_s22 = smov %s2747_s24  ;;  %s3370_s23 = smov %s3373_s26 }
 0xb15   :  { %25 = sbr.rel (!%p23_p9) target bundleno = 9 (0x9), region = 139 }
 0xb18   : > { %s3371_s24 = smov %s3367_s28 }

</bundles_post_ra>
